<compile_context>
chip_gen: v7x
topology: tpu7x:2x2x1
jax: 0.10.0
libtpu: 0.0.40
codegen_flags: <defaults>
</compile_context>

<pallas_src>
import functools
import math

import jax
import jax.numpy as jnp
from jax import lax
from jax.experimental import pallas as pl
from jax.experimental.pallas import tpu as pltpu

_LANE = 128
_TILE_ROWS = 1024  # 1024 x 128 f32 = 512 KiB / block; 6 inputs x 2 bufs ~ 6.3 MiB VMEM.


# ----------------------------------------------------------------------------
# Kernel 1: fused dice + BCE partial sums for the five segmentation heads.
# ----------------------------------------------------------------------------
def _dice_bce5_kernel(x0_ref, x1_ref, x2_ref, x3_ref, x4_ref, t_ref, acc_ref,
                      *, n_valid, tile_rows, needs_mask):
    """Accumulate per-lane partial sums for one sample across row tiles.

    acc_ref: resident output block, shape (16, 128):
      row 0        : sum(t)                     (shared by all heads)
      row 1 + 3*h  : sum(sigmoid(x_h))
      row 2 + 3*h  : sum(sigmoid(x_h) * t)
      row 3 + 3*h  : sum(elementwise BCE-with-logits(x_h, t))
    """
    j = pl.program_id(1)

    @pl.when(j == 0)
    def _init():
        acc_ref[...] = jnp.zeros_like(acc_ref)

    t = t_ref[...].astype(jnp.float32)  # (tile_rows, 128)

    if needs_mask:
        rows = lax.broadcasted_iota(jnp.int32, t.shape, 0) + j * tile_rows
        cols = lax.broadcasted_iota(jnp.int32, t.shape, 1)
        valid = rows * _LANE + cols < n_valid
        tm = jnp.where(valid, t, 0.0)
    else:
        valid = None
        tm = t

    acc_ref[0, :] += jnp.sum(tm, axis=0)

    for h, x_ref in enumerate((x0_ref, x1_ref, x2_ref, x3_ref, x4_ref)):
        x = x_ref[...].astype(jnp.float32)
        # One exp per element, reused for sigmoid and the stable BCE log term.
        e = jnp.exp(-jnp.abs(x))                      # exp(-|x|) in (0, 1]
        s = jnp.where(x >= 0.0, 1.0, e) / (1.0 + e)   # sigmoid(x), stable
        bce = jnp.maximum(x, 0.0) - x * tm + jnp.log(1.0 + e)
        if needs_mask:
            s = jnp.where(valid, s, 0.0)
            bce = jnp.where(valid, bce, 0.0)
        acc_ref[1 + 3 * h, :] += jnp.sum(s, axis=0)
        acc_ref[2 + 3 * h, :] += jnp.sum(s * tm, axis=0)
        acc_ref[3 + 3 * h, :] += jnp.sum(bce, axis=0)


def _dice_bce_all(xs, t):
    """sum_h [ dice_loss(xs[h], t) + BCEWithLogitsLoss(mean)(xs[h], t) ]."""
    assert len(xs) == 5
    for x in xs:
        assert x.shape == t.shape, (x.shape, t.shape)
    B = t.shape[0]
    M = math.prod(t.shape[1:])
    Mp = pl.cdiv(M, _LANE) * _LANE

    def to3(a):
        af = a.reshape(B, M)
        if Mp != M:  # only when C*H*W is not a multiple of 128 (rare)
            af = jnp.pad(af, ((0, 0), (0, Mp - M)))
        return af.reshape(B, Mp // _LANE, _LANE)

    xs3 = [to3(x) for x in xs]
    t3 = to3(t)
    R = Mp // _LANE
    tile_rows = R if R <= _TILE_ROWS else _TILE_ROWS  # _TILE_ROWS is a multiple of 8
    n_row_tiles = pl.cdiv(R, tile_rows)
    needs_mask = (Mp != M) or (R % tile_rows != 0)

    data_spec = pl.BlockSpec((None, tile_rows, _LANE), lambda i, j: (i, j, 0))
    kern = functools.partial(_dice_bce5_kernel, n_valid=M, tile_rows=tile_rows,
                             needs_mask=needs_mask)
    part = pl.pallas_call(
        kern,
        out_shape=jax.ShapeDtypeStruct((B, 16, _LANE), jnp.float32),
        grid_spec=pltpu.PrefetchScalarGridSpec(
            num_scalar_prefetch=0,
            grid=(B, n_row_tiles),
            in_specs=[data_spec] * 6,
            out_specs=pl.BlockSpec((None, 16, _LANE), lambda i, j: (i, 0, 0)),
        ),
        compiler_params=pltpu.CompilerParams(
            dimension_semantics=("parallel", "arbitrary")),
    )(*xs3, t3)

    sums = jnp.sum(part, axis=-1)          # (B, 16): final cross-lane reduce in JAX
    b_sum = sums[:, 0]
    total = jnp.float32(0.0)
    denom = jnp.float32(B * M)
    for h in range(5):
        a = sums[:, 1 + 3 * h]
        ab = sums[:, 2 + 3 * h]
        bce_sum = sums[:, 3 + 3 * h]
        dice = 1.0 - jnp.mean(2.0 * (ab + 1.0) / (a + b_sum + 1.0))
        bce = jnp.sum(bce_sum) / denom
        total = total + dice + bce
    return total


# ----------------------------------------------------------------------------
# Kernel 2: CTLoss head — 5x5 morphological edge target + BCE, fused per sample.
# ----------------------------------------------------------------------------
def _edge_bce_kernel(x_ref, tp0_ref, tp1_ref, out_ref, *, height, width):
    """edge = maxpool5(t) - minpool5(t); out_ref = per-column sums of BCE(x, edge).

    tp0_ref: targets padded by 2 with 0.0 (neutral for max; targets in [0,1])
    tp1_ref: targets padded by 2 with 1.0 (neutral for min; targets in [0,1])
    """
    x = x_ref[...].astype(jnp.float32)                                     # (H, W)

    dil = tp0_ref[pl.ds(2, height), pl.ds(2, width)].astype(jnp.float32)   # center tap
    ero = tp1_ref[pl.ds(2, height), pl.ds(2, width)].astype(jnp.float32)
    for dr in range(5):
        for dc in range(5):
            if dr == 2 and dc == 2:
                continue
            dil = jnp.maximum(
                dil, tp0_ref[pl.ds(dr, height), pl.ds(dc, width)].astype(jnp.float32))
            ero = jnp.minimum(
                ero, tp1_ref[pl.ds(dr, height), pl.ds(dc, width)].astype(jnp.float32))

    edge = dil - ero
    bce = jnp.maximum(x, 0.0) - x * edge + jnp.log(1.0 + jnp.exp(-jnp.abs(x)))
    out_ref[...] = jnp.sum(bce, axis=0, keepdims=True)                     # (1, W)


def _edge_bce(x, t):
    """CTLoss(x, t) = BCEWithLogitsLoss(mean)(x, mask_to_edge(t))."""
    assert x.shape == t.shape, (x.shape, t.shape)
    B, C, H, W = x.shape
    assert C == 1, "targets.unsqueeze(1) implies a single channel"

    # Pad values 0 / 1 are neutral for max / min when targets lie in [0,1],
    # reproducing MaxPool2d's implicit -inf padding.
    tp0 = jnp.pad(t, ((0, 0), (0, 0), (2, 2), (2, 2)), constant_values=0.0)
    tp1 = jnp.pad(t, ((0, 0), (0, 0), (2, 2), (2, 2)), constant_values=1.0)

    kern = functools.partial(_edge_bce_kernel, height=H, width=W)
    col_sums = pl.pallas_call(
        kern,
        out_shape=jax.ShapeDtypeStruct((B, 1, W), jnp.float32),
        grid_spec=pltpu.PrefetchScalarGridSpec(
            num_scalar_prefetch=0,
            grid=(B,),
            in_specs=[
                pl.BlockSpec((None, None, H, W), lambda b: (b, 0, 0, 0)),
                pl.BlockSpec((None, None, H + 4, W + 4), lambda b: (b, 0, 0, 0)),
                pl.BlockSpec((None, None, H + 4, W + 4), lambda b: (b, 0, 0, 0)),
            ],
            out_specs=pl.BlockSpec((None, 1, W), lambda b: (b, 0, 0)),
        ),
        compiler_params=pltpu.CompilerParams(dimension_semantics=("parallel",)),
        # TODO(synk): for very large H*W, tile image rows with a 2-row halo
        # instead of whole-image blocks.
    )(x, tp0, tp1)
    return jnp.sum(col_sums) / jnp.float32(B * C * H * W)


# ----------------------------------------------------------------------------
# Full ComputeLoss forward.
# ----------------------------------------------------------------------------
def compute_loss(outputs, targets):
    """outputs: sequence of 6 arrays (B,1,H,W); targets: (B,H,W)."""
    t4 = targets[:, None, :, :]
    return _dice_bce_all(list(outputs[:5]), t4) + _edge_bce(outputs[5], t4)


# ----------------------------------------------------------------------------
# Pure-JAX reference (mirrors the PyTorch module).
# ----------------------------------------------------------------------------
def _reference(outputs, targets):
    t = targets[:, None, :, :].astype(jnp.float32)

    def bce_mean(x, tt):
        x = x.astype(jnp.float32)
        return jnp.mean(jnp.maximum(x, 0.0) - x * tt + jnp.log(1.0 + jnp.exp(-jnp.abs(x))))

    def dice(x, tt):
        s = jax.nn.sigmoid(x.astype(jnp.float32))
        a = jnp.sum(s, axis=(1, 2, 3))
        b = jnp.sum(tt, axis=(1, 2, 3))
        ab = jnp.sum(s * tt, axis=(1, 2, 3))
        return 1.0 - jnp.mean(2.0 * (ab + 1.0) / (a + b + 1.0))

    def maxpool5(v):
        return lax.reduce_window(v, -jnp.inf, lax.max, (1, 1, 5, 5), (1, 1, 1, 1),
                                 [(0, 0), (0, 0), (2, 2), (2, 2)])

    total = jnp.float32(0.0)
    for i in range(5):
        total = total + dice(outputs[i], t) + bce_mean(outputs[i], t)
    dilation = maxpool5(t)
    erosion = 1.0 - maxpool5(1.0 - t)
    edge = dilation - erosion
    total = total + bce_mean(outputs[5], edge)
    return total


if __name__ == "__main__":
    key = jax.random.PRNGKey(0)
    ks = jax.random.split(key, 7)

    B, H, W = 2, 16, 16
    outputs = [jax.random.normal(ks[i], (B, 1, H, W), dtype=jnp.float32) * 2.0
               for i in range(6)]
    targets = jax.random.bernoulli(ks[6], 0.3, (B, H, W)).astype(jnp.float32)

    loss = jax.block_until_ready(jax.jit(compute_loss)(outputs, targets))
    ref = jax.block_until_ready(_reference(outputs, targets))
    assert jnp.allclose(loss, ref, rtol=1e-4, atol=1e-4), (loss, ref)

    print("KERNEL_OK")
</pallas_src>

<mosaic_0001>
module attributes {stable_mosaic.version = 11 : i64} {
  func.func @_dice_bce5_kernel(%arg0: i32, %arg1: i32, %arg2: memref<1x2x128xf32, #tpu.memory_space<vmem>>, %arg3: memref<1x2x128xf32, #tpu.memory_space<vmem>>, %arg4: memref<1x2x128xf32, #tpu.memory_space<vmem>>, %arg5: memref<1x2x128xf32, #tpu.memory_space<vmem>>, %arg6: memref<1x2x128xf32, #tpu.memory_space<vmem>>, %arg7: memref<1x2x128xf32, #tpu.memory_space<vmem>>, %arg8: memref<1x16x128xf32, #tpu.memory_space<vmem>>) attributes {dimension_semantics = [#tpu.dimension_semantics<parallel>, #tpu.dimension_semantics<arbitrary>], iteration_bounds = array<i64: 2, 1>, scalar_prefetch = 0 : i64, scratch_operands = 0 : i64, tpu.core_type = #tpu.core_type<tc>, window_params = [{transform_indices = @transform_0, window_bounds = array<i64: 1, 2, 128>}, {transform_indices = @transform_1, window_bounds = array<i64: 1, 2, 128>}, {transform_indices = @transform_2, window_bounds = array<i64: 1, 2, 128>}, {transform_indices = @transform_3, window_bounds = array<i64: 1, 2, 128>}, {transform_indices = @transform_4, window_bounds = array<i64: 1, 2, 128>}, {transform_indices = @transform_5, window_bounds = array<i64: 1, 2, 128>}, {transform_indices = @transform_6, window_bounds = array<i64: 1, 16, 128>}]} {
    %c0_i32 = arith.constant 0 : i32
    %0 = arith.cmpi eq, %arg1, %c0_i32 : i32
    %1 = arith.extui %0 : i1 to i32
    %c0_i32_0 = arith.constant 0 : i32
    %2 = arith.cmpi ne, %1, %c0_i32_0 : i32
    scf.if %2 {
      %cst_144 = arith.constant 0.000000e+00 : f32
      %227 = vector.broadcast %cst_144 : f32 to vector<16x128xf32>
      %c0_145 = arith.constant 0 : index
      %c0_146 = arith.constant 0 : index
      %c0_147 = arith.constant 0 : index
      %228 = vector.load %arg8[%c0_145, %c0_146, %c0_147] : memref<1x16x128xf32, #tpu.memory_space<vmem>>, vector<1x16x128xf32>
      %229 = vector.shape_cast %228 : vector<1x16x128xf32> to vector<16x128xf32>
      %230 = vector.shape_cast %227 : vector<16x128xf32> to vector<1x16x128xf32>
      tpu.vector_store %arg8[%c0_145, %c0_146, %c0_147], %230 {strides = array<i32>} : memref<1x16x128xf32, #tpu.memory_space<vmem>>, vector<1x16x128xf32>,
    } else {
    }
    %c0 = arith.constant 0 : index
    %c0_1 = arith.constant 0 : index
    %c0_2 = arith.constant 0 : index
    %3 = vector.load %arg7[%c0, %c0_1, %c0_2] : memref<1x2x128xf32, #tpu.memory_space<vmem>>, vector<1x2x128xf32>
    %4 = vector.shape_cast %3 : vector<1x2x128xf32> to vector<2x128xf32>
    %c0_3 = arith.constant 0 : index
    %c0_4 = arith.constant 0 : index
    %c0_5 = arith.constant 0 : index
    %5 = vector.load %arg8[%c0_3, %c0_4, %c0_5] : memref<1x16x128xf32, #tpu.memory_space<vmem>>, vector<1x1x128xf32>
    %6 = vector.shape_cast %5 : vector<1x1x128xf32> to vector<128xf32>
    %cst = arith.constant dense<0.000000e+00> : vector<128xf32>
    %7 = vector.multi_reduction <add>, %4, %cst [0] : vector<2x128xf32> to vector<128xf32>
    %8 = arith.addf %6, %7 : vector<128xf32>
    %c0_6 = arith.constant 0 : index
    %c0_7 = arith.constant 0 : index
    %c0_8 = arith.constant 0 : index
    %9 = vector.load %arg8[%c0_6, %c0_7, %c0_8] : memref<1x16x128xf32, #tpu.memory_space<vmem>>, vector<1x1x128xf32>
    %10 = vector.shape_cast %9 : vector<1x1x128xf32> to vector<128xf32>
    %11 = vector.shape_cast %8 : vector<128xf32> to vector<1x1x128xf32>
    tpu.vector_store %arg8[%c0_6, %c0_7, %c0_8], %11 {strides = array<i32>} : memref<1x16x128xf32, #tpu.memory_space<vmem>>, vector<1x1x128xf32>,
    %c0_9 = arith.constant 0 : index
    %c0_10 = arith.constant 0 : index
    %c0_11 = arith.constant 0 : index
    %12 = vector.load %arg2[%c0_9, %c0_10, %c0_11] : memref<1x2x128xf32, #tpu.memory_space<vmem>>, vector<1x2x128xf32>
    %13 = vector.shape_cast %12 : vector<1x2x128xf32> to vector<2x128xf32>
    %14 = math.absf %13 : vector<2x128xf32>
    %cst_12 = arith.constant 0.000000e+00 : f32
    %15 = vector.broadcast %cst_12 : f32 to vector<2x128xf32>
    %16 = arith.subf %15, %14 : vector<2x128xf32>
    %17 = math.exp %16 : vector<2x128xf32>
    %cst_13 = arith.constant 0.000000e+00 : f32
    %18 = vector.broadcast %cst_13 : f32 to vector<2x128xf32>
    %19 = arith.cmpf oge, %13, %18 : vector<2x128xf32>
    %cst_14 = arith.constant 1.000000e+00 : f32
    %20 = vector.broadcast %cst_14 : f32 to vector<2x128xf32>
    %21 = arith.select %19, %20, %17 : vector<2x128xi1>, vector<2x128xf32>
    %cst_15 = arith.constant 1.000000e+00 : f32
    %22 = vector.broadcast %cst_15 : f32 to vector<2x128xf32>
    %23 = arith.addf %22, %17 : vector<2x128xf32>
    %24 = arith.divf %21, %23 : vector<2x128xf32>
    %cst_16 = arith.constant 0.000000e+00 : f32
    %25 = vector.broadcast %cst_16 : f32 to vector<2x128xf32>
    %26 = arith.maximumf %13, %25 : vector<2x128xf32>
    %27 = arith.mulf %13, %4 : vector<2x128xf32>
    %28 = arith.subf %26, %27 : vector<2x128xf32>
    %cst_17 = arith.constant 1.000000e+00 : f32
    %29 = vector.broadcast %cst_17 : f32 to vector<2x128xf32>
    %30 = arith.addf %29, %17 : vector<2x128xf32>
    %31 = math.log %30 : vector<2x128xf32>
    %32 = arith.addf %28, %31 : vector<2x128xf32>
    %c0_18 = arith.constant 0 : index
    %c1 = arith.constant 1 : index
    %c0_19 = arith.constant 0 : index
    %33 = vector.load %arg8[%c0_18, %c1, %c0_19] : memref<1x16x128xf32, #tpu.memory_space<vmem>>, vector<1x1x128xf32>
    %34 = vector.shape_cast %33 : vector<1x1x128xf32> to vector<128xf32>
    %cst_20 = arith.constant dense<0.000000e+00> : vector<128xf32>
    %35 = vector.multi_reduction <add>, %24, %cst_20 [0] : vector<2x128xf32> to vector<128xf32>
    %36 = arith.addf %34, %35 : vector<128xf32>
    %c0_21 = arith.constant 0 : index
    %c1_22 = arith.constant 1 : index
    %c0_23 = arith.constant 0 : index
    %37 = vector.load %arg8[%c0_21, %c1_22, %c0_23] : memref<1x16x128xf32, #tpu.memory_space<vmem>>, vector<1x1x128xf32>
    %38 = vector.shape_cast %37 : vector<1x1x128xf32> to vector<128xf32>
    %39 = vector.shape_cast %36 : vector<128xf32> to vector<1x1x128xf32>
    tpu.vector_store %arg8[%c0_21, %c1_22, %c0_23], %39 {strides = array<i32>} : memref<1x16x128xf32, #tpu.memory_space<vmem>>, vector<1x1x128xf32>,
    %c0_24 = arith.constant 0 : index
    %c2 = arith.constant 2 : index
    %c0_25 = arith.constant 0 : index
    %40 = vector.load %arg8[%c0_24, %c2, %c0_25] : memref<1x16x128xf32, #tpu.memory_space<vmem>>, vector<1x1x128xf32>
    %41 = vector.shape_cast %40 : vector<1x1x128xf32> to vector<128xf32>
    %42 = arith.mulf %24, %4 : vector<2x128xf32>
    %cst_26 = arith.constant dense<0.000000e+00> : vector<128xf32>
    %43 = vector.multi_reduction <add>, %42, %cst_26 [0] : vector<2x128xf32> to vector<128xf32>
    %44 = arith.addf %41, %43 : vector<128xf32>
    %c0_27 = arith.constant 0 : index
    %c2_28 = arith.constant 2 : index
    %c0_29 = arith.constant 0 : index
    %45 = vector.load %arg8[%c0_27, %c2_28, %c0_29] : memref<1x16x128xf32, #tpu.memory_space<vmem>>, vector<1x1x128xf32>
    %46 = vector.shape_cast %45 : vector<1x1x128xf32> to vector<128xf32>
    %47 = vector.shape_cast %44 : vector<128xf32> to vector<1x1x128xf32>
    tpu.vector_store %arg8[%c0_27, %c2_28, %c0_29], %47 {strides = array<i32>} : memref<1x16x128xf32, #tpu.memory_space<vmem>>, vector<1x1x128xf32>,
    %c0_30 = arith.constant 0 : index
    %c3 = arith.constant 3 : index
    %c0_31 = arith.constant 0 : index
    %48 = vector.load %arg8[%c0_30, %c3, %c0_31] : memref<1x16x128xf32, #tpu.memory_space<vmem>>, vector<1x1x128xf32>
    %49 = vector.shape_cast %48 : vector<1x1x128xf32> to vector<128xf32>
    %cst_32 = arith.constant dense<0.000000e+00> : vector<128xf32>
    %50 = vector.multi_reduction <add>, %32, %cst_32 [0] : vector<2x128xf32> to vector<128xf32>
    %51 = arith.addf %49, %50 : vector<128xf32>
    %c0_33 = arith.constant 0 : index
    %c3_34 = arith.constant 3 : index
    %c0_35 = arith.constant 0 : index
    %52 = vector.load %arg8[%c0_33, %c3_34, %c0_35] : memref<1x16x128xf32, #tpu.memory_space<vmem>>, vector<1x1x128xf32>
    %53 = vector.shape_cast %52 : vector<1x1x128xf32> to vector<128xf32>
    %54 = vector.shape_cast %51 : vector<128xf32> to vector<1x1x128xf32>
    tpu.vector_store %arg8[%c0_33, %c3_34, %c0_35], %54 {strides = array<i32>} : memref<1x16x128xf32, #tpu.memory_space<vmem>>, vector<1x1x128xf32>,
    %c0_36 = arith.constant 0 : index
    %c0_37 = arith.constant 0 : index
    %c0_38 = arith.constant 0 : index
    %55 = vector.load %arg3[%c0_36, %c0_37, %c0_38] : memref<1x2x128xf32, #tpu.memory_space<vmem>>, vector<1x2x128xf32>
    %56 = vector.shape_cast %55 : vector<1x2x128xf32> to vector<2x128xf32>
    %57 = math.absf %56 : vector<2x128xf32>
    %cst_39 = arith.constant 0.000000e+00 : f32
    %58 = vector.broadcast %cst_39 : f32 to vector<2x128xf32>
    %59 = arith.subf %58, %57 : vector<2x128xf32>
    %60 = math.exp %59 : vector<2x128xf32>
    %cst_40 = arith.constant 0.000000e+00 : f32
    %61 = vector.broadcast %cst_40 : f32 to vector<2x128xf32>
    %62 = arith.cmpf oge, %56, %61 : vector<2x128xf32>
    %cst_41 = arith.constant 1.000000e+00 : f32
    %63 = vector.broadcast %cst_41 : f32 to vector<2x128xf32>
    %64 = arith.select %62, %63, %60 : vector<2x128xi1>, vector<2x128xf32>
    %cst_42 = arith.constant 1.000000e+00 : f32
    %65 = vector.broadcast %cst_42 : f32 to vector<2x128xf32>
    %66 = arith.addf %65, %60 : vector<2x128xf32>
    %67 = arith.divf %64, %66 : vector<2x128xf32>
    %cst_43 = arith.constant 0.000000e+00 : f32
    %68 = vector.broadcast %cst_43 : f32 to vector<2x128xf32>
    %69 = arith.maximumf %56, %68 : vector<2x128xf32>
    %70 = arith.mulf %56, %4 : vector<2x128xf32>
    %71 = arith.subf %69, %70 : vector<2x128xf32>
    %cst_44 = arith.constant 1.000000e+00 : f32
    %72 = vector.broadcast %cst_44 : f32 to vector<2x128xf32>
    %73 = arith.addf %72, %60 : vector<2x128xf32>
    %74 = math.log %73 : vector<2x128xf32>
    %75 = arith.addf %71, %74 : vector<2x128xf32>
    %c0_45 = arith.constant 0 : index
    %c4 = arith.constant 4 : index
    %c0_46 = arith.constant 0 : index
    %76 = vector.load %arg8[%c0_45, %c4, %c0_46] : memref<1x16x128xf32, #tpu.memory_space<vmem>>, vector<1x1x128xf32>
    %77 = vector.shape_cast %76 : vector<1x1x128xf32> to vector<128xf32>
    %cst_47 = arith.constant dense<0.000000e+00> : vector<128xf32>
    %78 = vector.multi_reduction <add>, %67, %cst_47 [0] : vector<2x128xf32> to vector<128xf32>
    %79 = arith.addf %77, %78 : vector<128xf32>
    %c0_48 = arith.constant 0 : index
    %c4_49 = arith.constant 4 : index
    %c0_50 = arith.constant 0 : index
    %80 = vector.load %arg8[%c0_48, %c4_49, %c0_50] : memref<1x16x128xf32, #tpu.memory_space<vmem>>, vector<1x1x128xf32>
    %81 = vector.shape_cast %80 : vector<1x1x128xf32> to vector<128xf32>
    %82 = vector.shape_cast %79 : vector<128xf32> to vector<1x1x128xf32>
    tpu.vector_store %arg8[%c0_48, %c4_49, %c0_50], %82 {strides = array<i32>} : memref<1x16x128xf32, #tpu.memory_space<vmem>>, vector<1x1x128xf32>,
    %c0_51 = arith.constant 0 : index
    %c5 = arith.constant 5 : index
    %c0_52 = arith.constant 0 : index
    %83 = vector.load %arg8[%c0_51, %c5, %c0_52] : memref<1x16x128xf32, #tpu.memory_space<vmem>>, vector<1x1x128xf32>
    %84 = vector.shape_cast %83 : vector<1x1x128xf32> to vector<128xf32>
    %85 = arith.mulf %67, %4 : vector<2x128xf32>
    %cst_53 = arith.constant dense<0.000000e+00> : vector<128xf32>
    %86 = vector.multi_reduction <add>, %85, %cst_53 [0] : vector<2x128xf32> to vector<128xf32>
    %87 = arith.addf %84, %86 : vector<128xf32>
    %c0_54 = arith.constant 0 : index
    %c5_55 = arith.constant 5 : index
    %c0_56 = arith.constant 0 : index
    %88 = vector.load %arg8[%c0_54, %c5_55, %c0_56] : memref<1x16x128xf32, #tpu.memory_space<vmem>>, vector<1x1x128xf32>
    %89 = vector.shape_cast %88 : vector<1x1x128xf32> to vector<128xf32>
    %90 = vector.shape_cast %87 : vector<128xf32> to vector<1x1x128xf32>
    tpu.vector_store %arg8[%c0_54, %c5_55, %c0_56], %90 {strides = array<i32>} : memref<1x16x128xf32, #tpu.memory_space<vmem>>, vector<1x1x128xf32>,
    %c0_57 = arith.constant 0 : index
    %c6 = arith.constant 6 : index
    %c0_58 = arith.constant 0 : index
    %91 = vector.load %arg8[%c0_57, %c6, %c0_58] : memref<1x16x128xf32, #tpu.memory_space<vmem>>, vector<1x1x128xf32>
    %92 = vector.shape_cast %91 : vector<1x1x128xf32> to vector<128xf32>
    %cst_59 = arith.constant dense<0.000000e+00> : vector<128xf32>
    %93 = vector.multi_reduction <add>, %75, %cst_59 [0] : vector<2x128xf32> to vector<128xf32>
    %94 = arith.addf %92, %93 : vector<128xf32>
    %c0_60 = arith.constant 0 : index
    %c6_61 = arith.constant 6 : index
    %c0_62 = arith.constant 0 : index
    %95 = vector.load %arg8[%c0_60, %c6_61, %c0_62] : memref<1x16x128xf32, #tpu.memory_space<vmem>>, vector<1x1x128xf32>
    %96 = vector.shape_cast %95 : vector<1x1x128xf32> to vector<128xf32>
    %97 = vector.shape_cast %94 : vector<128xf32> to vector<1x1x128xf32>
    tpu.vector_store %arg8[%c0_60, %c6_61, %c0_62], %97 {strides = array<i32>} : memref<1x16x128xf32, #tpu.memory_space<vmem>>, vector<1x1x128xf32>,
    %c0_63 = arith.constant 0 : index
    %c0_64 = arith.constant 0 : index
    %c0_65 = arith.constant 0 : index
    %98 = vector.load %arg4[%c0_63, %c0_64, %c0_65] : memref<1x2x128xf32, #tpu.memory_space<vmem>>, vector<1x2x128xf32>
    %99 = vector.shape_cast %98 : vector<1x2x128xf32> to vector<2x128xf32>
    %100 = math.absf %99 : vector<2x128xf32>
    %cst_66 = arith.constant 0.000000e+00 : f32
    %101 = vector.broadcast %cst_66 : f32 to vector<2x128xf32>
    %102 = arith.subf %101, %100 : vector<2x128xf32>
    %103 = math.exp %102 : vector<2x128xf32>
    %cst_67 = arith.constant 0.000000e+00 : f32
    %104 = vector.broadcast %cst_67 : f32 to vector<2x128xf32>
    %105 = arith.cmpf oge, %99, %104 : vector<2x128xf32>
    %cst_68 = arith.constant 1.000000e+00 : f32
    %106 = vector.broadcast %cst_68 : f32 to vector<2x128xf32>
    %107 = arith.select %105, %106, %103 : vector<2x128xi1>, vector<2x128xf32>
    %cst_69 = arith.constant 1.000000e+00 : f32
    %108 = vector.broadcast %cst_69 : f32 to vector<2x128xf32>
    %109 = arith.addf %108, %103 : vector<2x128xf32>
    %110 = arith.divf %107, %109 : vector<2x128xf32>
    %cst_70 = arith.constant 0.000000e+00 : f32
    %111 = vector.broadcast %cst_70 : f32 to vector<2x128xf32>
    %112 = arith.maximumf %99, %111 : vector<2x128xf32>
    %113 = arith.mulf %99, %4 : vector<2x128xf32>
    %114 = arith.subf %112, %113 : vector<2x128xf32>
    %cst_71 = arith.constant 1.000000e+00 : f32
    %115 = vector.broadcast %cst_71 : f32 to vector<2x128xf32>
    %116 = arith.addf %115, %103 : vector<2x128xf32>
    %117 = math.log %116 : vector<2x128xf32>
    %118 = arith.addf %114, %117 : vector<2x128xf32>
    %c0_72 = arith.constant 0 : index
    %c7 = arith.constant 7 : index
    %c0_73 = arith.constant 0 : index
    %119 = vector.load %arg8[%c0_72, %c7, %c0_73] : memref<1x16x128xf32, #tpu.memory_space<vmem>>, vector<1x1x128xf32>
    %120 = vector.shape_cast %119 : vector<1x1x128xf32> to vector<128xf32>
    %cst_74 = arith.constant dense<0.000000e+00> : vector<128xf32>
    %121 = vector.multi_reduction <add>, %110, %cst_74 [0] : vector<2x128xf32> to vector<128xf32>
    %122 = arith.addf %120, %121 : vector<128xf32>
    %c0_75 = arith.constant 0 : index
    %c7_76 = arith.constant 7 : index
    %c0_77 = arith.constant 0 : index
    %123 = vector.load %arg8[%c0_75, %c7_76, %c0_77] : memref<1x16x128xf32, #tpu.memory_space<vmem>>, vector<1x1x128xf32>
    %124 = vector.shape_cast %123 : vector<1x1x128xf32> to vector<128xf32>
    %125 = vector.shape_cast %122 : vector<128xf32> to vector<1x1x128xf32>
    tpu.vector_store %arg8[%c0_75, %c7_76, %c0_77], %125 {strides = array<i32>} : memref<1x16x128xf32, #tpu.memory_space<vmem>>, vector<1x1x128xf32>,
    %c0_78 = arith.constant 0 : index
    %c8 = arith.constant 8 : index
    %c0_79 = arith.constant 0 : index
    %126 = vector.load %arg8[%c0_78, %c8, %c0_79] : memref<1x16x128xf32, #tpu.memory_space<vmem>>, vector<1x1x128xf32>
    %127 = vector.shape_cast %126 : vector<1x1x128xf32> to vector<128xf32>
    %128 = arith.mulf %110, %4 : vector<2x128xf32>
    %cst_80 = arith.constant dense<0.000000e+00> : vector<128xf32>
    %129 = vector.multi_reduction <add>, %128, %cst_80 [0] : vector<2x128xf32> to vector<128xf32>
    %130 = arith.addf %127, %129 : vector<128xf32>
    %c0_81 = arith.constant 0 : index
    %c8_82 = arith.constant 8 : index
    %c0_83 = arith.constant 0 : index
    %131 = vector.load %arg8[%c0_81, %c8_82, %c0_83] : memref<1x16x128xf32, #tpu.memory_space<vmem>>, vector<1x1x128xf32>
    %132 = vector.shape_cast %131 : vector<1x1x128xf32> to vector<128xf32>
    %133 = vector.shape_cast %130 : vector<128xf32> to vector<1x1x128xf32>
    tpu.vector_store %arg8[%c0_81, %c8_82, %c0_83], %133 {strides = array<i32>} : memref<1x16x128xf32, #tpu.memory_space<vmem>>, vector<1x1x128xf32>,
    %c0_84 = arith.constant 0 : index
    %c9 = arith.constant 9 : index
    %c0_85 = arith.constant 0 : index
    %134 = vector.load %arg8[%c0_84, %c9, %c0_85] : memref<1x16x128xf32, #tpu.memory_space<vmem>>, vector<1x1x128xf32>
    %135 = vector.shape_cast %134 : vector<1x1x128xf32> to vector<128xf32>
    %cst_86 = arith.constant dense<0.000000e+00> : vector<128xf32>
    %136 = vector.multi_reduction <add>, %118, %cst_86 [0] : vector<2x128xf32> to vector<128xf32>
    %137 = arith.addf %135, %136 : vector<128xf32>
    %c0_87 = arith.constant 0 : index
    %c9_88 = arith.constant 9 : index
    %c0_89 = arith.constant 0 : index
    %138 = vector.load %arg8[%c0_87, %c9_88, %c0_89] : memref<1x16x128xf32, #tpu.memory_space<vmem>>, vector<1x1x128xf32>
    %139 = vector.shape_cast %138 : vector<1x1x128xf32> to vector<128xf32>
    %140 = vector.shape_cast %137 : vector<128xf32> to vector<1x1x128xf32>
    tpu.vector_store %arg8[%c0_87, %c9_88, %c0_89], %140 {strides = array<i32>} : memref<1x16x128xf32, #tpu.memory_space<vmem>>, vector<1x1x128xf32>,
    %c0_90 = arith.constant 0 : index
    %c0_91 = arith.constant 0 : index
    %c0_92 = arith.constant 0 : index
    %141 = vector.load %arg5[%c0_90, %c0_91, %c0_92] : memref<1x2x128xf32, #tpu.memory_space<vmem>>, vector<1x2x128xf32>
    %142 = vector.shape_cast %141 : vector<1x2x128xf32> to vector<2x128xf32>
    %143 = math.absf %142 : vector<2x128xf32>
    %cst_93 = arith.constant 0.000000e+00 : f32
    %144 = vector.broadcast %cst_93 : f32 to vector<2x128xf32>
    %145 = arith.subf %144, %143 : vector<2x128xf32>
    %146 = math.exp %145 : vector<2x128xf32>
    %cst_94 = arith.constant 0.000000e+00 : f32
    %147 = vector.broadcast %cst_94 : f32 to vector<2x128xf32>
    %148 = arith.cmpf oge, %142, %147 : vector<2x128xf32>
    %cst_95 = arith.constant 1.000000e+00 : f32
    %149 = vector.broadcast %cst_95 : f32 to vector<2x128xf32>
    %150 = arith.select %148, %149, %146 : vector<2x128xi1>, vector<2x128xf32>
    %cst_96 = arith.constant 1.000000e+00 : f32
    %151 = vector.broadcast %cst_96 : f32 to vector<2x128xf32>
    %152 = arith.addf %151, %146 : vector<2x128xf32>
    %153 = arith.divf %150, %152 : vector<2x128xf32>
    %cst_97 = arith.constant 0.000000e+00 : f32
    %154 = vector.broadcast %cst_97 : f32 to vector<2x128xf32>
    %155 = arith.maximumf %142, %154 : vector<2x128xf32>
    %156 = arith.mulf %142, %4 : vector<2x128xf32>
    %157 = arith.subf %155, %156 : vector<2x128xf32>
    %cst_98 = arith.constant 1.000000e+00 : f32
    %158 = vector.broadcast %cst_98 : f32 to vector<2x128xf32>
    %159 = arith.addf %158, %146 : vector<2x128xf32>
    %160 = math.log %159 : vector<2x128xf32>
    %161 = arith.addf %157, %160 : vector<2x128xf32>
    %c0_99 = arith.constant 0 : index
    %c10 = arith.constant 10 : index
    %c0_100 = arith.constant 0 : index
    %162 = vector.load %arg8[%c0_99, %c10, %c0_100] : memref<1x16x128xf32, #tpu.memory_space<vmem>>, vector<1x1x128xf32>
    %163 = vector.shape_cast %162 : vector<1x1x128xf32> to vector<128xf32>
    %cst_101 = arith.constant dense<0.000000e+00> : vector<128xf32>
    %164 = vector.multi_reduction <add>, %153, %cst_101 [0] : vector<2x128xf32> to vector<128xf32>
    %165 = arith.addf %163, %164 : vector<128xf32>
    %c0_102 = arith.constant 0 : index
    %c10_103 = arith.constant 10 : index
    %c0_104 = arith.constant 0 : index
    %166 = vector.load %arg8[%c0_102, %c10_103, %c0_104] : memref<1x16x128xf32, #tpu.memory_space<vmem>>, vector<1x1x128xf32>
    %167 = vector.shape_cast %166 : vector<1x1x128xf32> to vector<128xf32>
    %168 = vector.shape_cast %165 : vector<128xf32> to vector<1x1x128xf32>
    tpu.vector_store %arg8[%c0_102, %c10_103, %c0_104], %168 {strides = array<i32>} : memref<1x16x128xf32, #tpu.memory_space<vmem>>, vector<1x1x128xf32>,
    %c0_105 = arith.constant 0 : index
    %c11 = arith.constant 11 : index
    %c0_106 = arith.constant 0 : index
    %169 = vector.load %arg8[%c0_105, %c11, %c0_106] : memref<1x16x128xf32, #tpu.memory_space<vmem>>, vector<1x1x128xf32>
    %170 = vector.shape_cast %169 : vector<1x1x128xf32> to vector<128xf32>
    %171 = arith.mulf %153, %4 : vector<2x128xf32>
    %cst_107 = arith.constant dense<0.000000e+00> : vector<128xf32>
    %172 = vector.multi_reduction <add>, %171, %cst_107 [0] : vector<2x128xf32> to vector<128xf32>
    %173 = arith.addf %170, %172 : vector<128xf32>
    %c0_108 = arith.constant 0 : index
    %c11_109 = arith.constant 11 : index
    %c0_110 = arith.constant 0 : index
    %174 = vector.load %arg8[%c0_108, %c11_109, %c0_110] : memref<1x16x128xf32, #tpu.memory_space<vmem>>, vector<1x1x128xf32>
    %175 = vector.shape_cast %174 : vector<1x1x128xf32> to vector<128xf32>
    %176 = vector.shape_cast %173 : vector<128xf32> to vector<1x1x128xf32>
    tpu.vector_store %arg8[%c0_108, %c11_109, %c0_110], %176 {strides = array<i32>} : memref<1x16x128xf32, #tpu.memory_space<vmem>>, vector<1x1x128xf32>,
    %c0_111 = arith.constant 0 : index
    %c12 = arith.constant 12 : index
    %c0_112 = arith.constant 0 : index
    %177 = vector.load %arg8[%c0_111, %c12, %c0_112] : memref<1x16x128xf32, #tpu.memory_space<vmem>>, vector<1x1x128xf32>
    %178 = vector.shape_cast %177 : vector<1x1x128xf32> to vector<128xf32>
    %cst_113 = arith.constant dense<0.000000e+00> : vector<128xf32>
    %179 = vector.multi_reduction <add>, %161, %cst_113 [0] : vector<2x128xf32> to vector<128xf32>
    %180 = arith.addf %178, %179 : vector<128xf32>
    %c0_114 = arith.constant 0 : index
    %c12_115 = arith.constant 12 : index
    %c0_116 = arith.constant 0 : index
    %181 = vector.load %arg8[%c0_114, %c12_115, %c0_116] : memref<1x16x128xf32, #tpu.memory_space<vmem>>, vector<1x1x128xf32>
    %182 = vector.shape_cast %181 : vector<1x1x128xf32> to vector<128xf32>
    %183 = vector.shape_cast %180 : vector<128xf32> to vector<1x1x128xf32>
    tpu.vector_store %arg8[%c0_114, %c12_115, %c0_116], %183 {strides = array<i32>} : memref<1x16x128xf32, #tpu.memory_space<vmem>>, vector<1x1x128xf32>,
    %c0_117 = arith.constant 0 : index
    %c0_118 = arith.constant 0 : index
    %c0_119 = arith.constant 0 : index
    %184 = vector.load %arg6[%c0_117, %c0_118, %c0_119] : memref<1x2x128xf32, #tpu.memory_space<vmem>>, vector<1x2x128xf32>
    %185 = vector.shape_cast %184 : vector<1x2x128xf32> to vector<2x128xf32>
    %186 = math.absf %185 : vector<2x128xf32>
    %cst_120 = arith.constant 0.000000e+00 : f32
    %187 = vector.broadcast %cst_120 : f32 to vector<2x128xf32>
    %188 = arith.subf %187, %186 : vector<2x128xf32>
    %189 = math.exp %188 : vector<2x128xf32>
    %cst_121 = arith.constant 0.000000e+00 : f32
    %190 = vector.broadcast %cst_121 : f32 to vector<2x128xf32>
    %191 = arith.cmpf oge, %185, %190 : vector<2x128xf32>
    %cst_122 = arith.constant 1.000000e+00 : f32
    %192 = vector.broadcast %cst_122 : f32 to vector<2x128xf32>
    %193 = arith.select %191, %192, %189 : vector<2x128xi1>, vector<2x128xf32>
    %cst_123 = arith.constant 1.000000e+00 : f32
    %194 = vector.broadcast %cst_123 : f32 to vector<2x128xf32>
    %195 = arith.addf %194, %189 : vector<2x128xf32>
    %196 = arith.divf %193, %195 : vector<2x128xf32>
    %cst_124 = arith.constant 0.000000e+00 : f32
    %197 = vector.broadcast %cst_124 : f32 to vector<2x128xf32>
    %198 = arith.maximumf %185, %197 : vector<2x128xf32>
    %199 = arith.mulf %185, %4 : vector<2x128xf32>
    %200 = arith.subf %198, %199 : vector<2x128xf32>
    %cst_125 = arith.constant 1.000000e+00 : f32
    %201 = vector.broadcast %cst_125 : f32 to vector<2x128xf32>
    %202 = arith.addf %201, %189 : vector<2x128xf32>
    %203 = math.log %202 : vector<2x128xf32>
    %204 = arith.addf %200, %203 : vector<2x128xf32>
    %c0_126 = arith.constant 0 : index
    %c13 = arith.constant 13 : index
    %c0_127 = arith.constant 0 : index
    %205 = vector.load %arg8[%c0_126, %c13, %c0_127] : memref<1x16x128xf32, #tpu.memory_space<vmem>>, vector<1x1x128xf32>
    %206 = vector.shape_cast %205 : vector<1x1x128xf32> to vector<128xf32>
    %cst_128 = arith.constant dense<0.000000e+00> : vector<128xf32>
    %207 = vector.multi_reduction <add>, %196, %cst_128 [0] : vector<2x128xf32> to vector<128xf32>
    %208 = arith.addf %206, %207 : vector<128xf32>
    %c0_129 = arith.constant 0 : index
    %c13_130 = arith.constant 13 : index
    %c0_131 = arith.constant 0 : index
    %209 = vector.load %arg8[%c0_129, %c13_130, %c0_131] : memref<1x16x128xf32, #tpu.memory_space<vmem>>, vector<1x1x128xf32>
    %210 = vector.shape_cast %209 : vector<1x1x128xf32> to vector<128xf32>
    %211 = vector.shape_cast %208 : vector<128xf32> to vector<1x1x128xf32>
    tpu.vector_store %arg8[%c0_129, %c13_130, %c0_131], %211 {strides = array<i32>} : memref<1x16x128xf32, #tpu.memory_space<vmem>>, vector<1x1x128xf32>,
    %c0_132 = arith.constant 0 : index
    %c14 = arith.constant 14 : index
    %c0_133 = arith.constant 0 : index
    %212 = vector.load %arg8[%c0_132, %c14, %c0_133] : memref<1x16x128xf32, #tpu.memory_space<vmem>>, vector<1x1x128xf32>
    %213 = vector.shape_cast %212 : vector<1x1x128xf32> to vector<128xf32>
    %214 = arith.mulf %196, %4 : vector<2x128xf32>
    %cst_134 = arith.constant dense<0.000000e+00> : vector<128xf32>
    %215 = vector.multi_reduction <add>, %214, %cst_134 [0] : vector<2x128xf32> to vector<128xf32>
    %216 = arith.addf %213, %215 : vector<128xf32>
    %c0_135 = arith.constant 0 : index
    %c14_136 = arith.constant 14 : index
    %c0_137 = arith.constant 0 : index
    %217 = vector.load %arg8[%c0_135, %c14_136, %c0_137] : memref<1x16x128xf32, #tpu.memory_space<vmem>>, vector<1x1x128xf32>
    %218 = vector.shape_cast %217 : vector<1x1x128xf32> to vector<128xf32>
    %219 = vector.shape_cast %216 : vector<128xf32> to vector<1x1x128xf32>
    tpu.vector_store %arg8[%c0_135, %c14_136, %c0_137], %219 {strides = array<i32>} : memref<1x16x128xf32, #tpu.memory_space<vmem>>, vector<1x1x128xf32>,
    %c0_138 = arith.constant 0 : index
    %c15 = arith.constant 15 : index
    %c0_139 = arith.constant 0 : index
    %220 = vector.load %arg8[%c0_138, %c15, %c0_139] : memref<1x16x128xf32, #tpu.memory_space<vmem>>, vector<1x1x128xf32>
    %221 = vector.shape_cast %220 : vector<1x1x128xf32> to vector<128xf32>
    %cst_140 = arith.constant dense<0.000000e+00> : vector<128xf32>
    %222 = vector.multi_reduction <add>, %204, %cst_140 [0] : vector<2x128xf32> to vector<128xf32>
    %223 = arith.addf %221, %222 : vector<128xf32>
    %c0_141 = arith.constant 0 : index
    %c15_142 = arith.constant 15 : index
    %c0_143 = arith.constant 0 : index
    %224 = vector.load %arg8[%c0_141, %c15_142, %c0_143] : memref<1x16x128xf32, #tpu.memory_space<vmem>>, vector<1x1x128xf32>
    %225 = vector.shape_cast %224 : vector<1x1x128xf32> to vector<128xf32>
    %226 = vector.shape_cast %223 : vector<128xf32> to vector<1x1x128xf32>
    tpu.vector_store %arg8[%c0_141, %c15_142, %c0_143], %226 {strides = array<i32>} : memref<1x16x128xf32, #tpu.memory_space<vmem>>, vector<1x1x128xf32>,
    return
  }
  func.func @transform_0(%arg0: i32, %arg1: i32) -> (i32, i32, i32) {
    %c0_i32 = arith.constant 0 : i32
    %c0_i32_0 = arith.constant 0 : i32
    return %arg0, %arg1, %c0_i32 : i32, i32, i32
  }
  func.func @transform_1(%arg0: i32, %arg1: i32) -> (i32, i32, i32) {
    %c0_i32 = arith.constant 0 : i32
    %c0_i32_0 = arith.constant 0 : i32
    return %arg0, %arg1, %c0_i32 : i32, i32, i32
  }
  func.func @transform_2(%arg0: i32, %arg1: i32) -> (i32, i32, i32) {
    %c0_i32 = arith.constant 0 : i32
    %c0_i32_0 = arith.constant 0 : i32
    return %arg0, %arg1, %c0_i32 : i32, i32, i32
  }
  func.func @transform_3(%arg0: i32, %arg1: i32) -> (i32, i32, i32) {
    %c0_i32 = arith.constant 0 : i32
    %c0_i32_0 = arith.constant 0 : i32
    return %arg0, %arg1, %c0_i32 : i32, i32, i32
  }
  func.func @transform_4(%arg0: i32, %arg1: i32) -> (i32, i32, i32) {
    %c0_i32 = arith.constant 0 : i32
    %c0_i32_0 = arith.constant 0 : i32
    return %arg0, %arg1, %c0_i32 : i32, i32, i32
  }
  func.func @transform_5(%arg0: i32, %arg1: i32) -> (i32, i32, i32) {
    %c0_i32 = arith.constant 0 : i32
    %c0_i32_0 = arith.constant 0 : i32
    return %arg0, %arg1, %c0_i32 : i32, i32, i32
  }
  func.func @transform_6(%arg0: i32, %arg1: i32) -> (i32, i32, i32) {
    %c0_i32 = arith.constant 0 : i32
    %c0_i32_0 = arith.constant 0 : i32
    %c0_i32_1 = arith.constant 0 : i32
    return %arg0, %c0_i32, %c0_i32_0 : i32, i32, i32
  }
}

module attributes {stable_mosaic.version = 11 : i64} {
  func.func @_edge_bce_kernel(%arg0: i32, %arg1: memref<1x1x16x16xf32, #tpu.memory_space<vmem>>, %arg2: memref<1x1x20x20xf32, #tpu.memory_space<vmem>>, %arg3: memref<1x1x20x20xf32, #tpu.memory_space<vmem>>, %arg4: memref<1x1x16xf32, #tpu.memory_space<vmem>>) attributes {dimension_semantics = [#tpu.dimension_semantics<parallel>], iteration_bounds = array<i64: 2>, scalar_prefetch = 0 : i64, scratch_operands = 0 : i64, tpu.core_type = #tpu.core_type<tc>, window_params = [{transform_indices = @transform_0, window_bounds = array<i64: 1, 1, 16, 16>}, {transform_indices = @transform_1, window_bounds = array<i64: 1, 1, 20, 20>}, {transform_indices = @transform_2, window_bounds = array<i64: 1, 1, 20, 20>}, {transform_indices = @transform_3, window_bounds = array<i64: 1, 1, 16>}]} {
    %c0 = arith.constant 0 : index
    %c0_0 = arith.constant 0 : index
    %c0_1 = arith.constant 0 : index
    %c0_2 = arith.constant 0 : index
    %0 = vector.load %arg1[%c0, %c0_0, %c0_1, %c0_2] : memref<1x1x16x16xf32, #tpu.memory_space<vmem>>, vector<1x1x16x16xf32>
    %1 = vector.shape_cast %0 : vector<1x1x16x16xf32> to vector<16x16xf32>
    %c0_3 = arith.constant 0 : index
    %c0_4 = arith.constant 0 : index
    %c2 = arith.constant 2 : index
    %c2_5 = arith.constant 2 : index
    %2 = vector.load %arg2[%c0_3, %c0_4, %c2, %c2_5] : memref<1x1x20x20xf32, #tpu.memory_space<vmem>>, vector<1x1x16x16xf32>
    %3 = vector.shape_cast %2 : vector<1x1x16x16xf32> to vector<16x16xf32>
    %c0_6 = arith.constant 0 : index
    %c0_7 = arith.constant 0 : index
    %c2_8 = arith.constant 2 : index
    %c2_9 = arith.constant 2 : index
    %4 = vector.load %arg3[%c0_6, %c0_7, %c2_8, %c2_9] : memref<1x1x20x20xf32, #tpu.memory_space<vmem>>, vector<1x1x16x16xf32>
    %5 = vector.shape_cast %4 : vector<1x1x16x16xf32> to vector<16x16xf32>
    %c0_10 = arith.constant 0 : index
    %c0_11 = arith.constant 0 : index
    %c0_12 = arith.constant 0 : index
    %c0_13 = arith.constant 0 : index
    %6 = vector.load %arg2[%c0_10, %c0_11, %c0_12, %c0_13] : memref<1x1x20x20xf32, #tpu.memory_space<vmem>>, vector<1x1x16x16xf32>
    %7 = vector.shape_cast %6 : vector<1x1x16x16xf32> to vector<16x16xf32>
    %8 = arith.maximumf %3, %7 : vector<16x16xf32>
    %c0_14 = arith.constant 0 : index
    %c0_15 = arith.constant 0 : index
    %c0_16 = arith.constant 0 : index
    %c0_17 = arith.constant 0 : index
    %9 = vector.load %arg3[%c0_14, %c0_15, %c0_16, %c0_17] : memref<1x1x20x20xf32, #tpu.memory_space<vmem>>, vector<1x1x16x16xf32>
    %10 = vector.shape_cast %9 : vector<1x1x16x16xf32> to vector<16x16xf32>
    %11 = arith.minimumf %5, %10 : vector<16x16xf32>
    %c0_18 = arith.constant 0 : index
    %c0_19 = arith.constant 0 : index
    %c0_20 = arith.constant 0 : index
    %c1 = arith.constant 1 : index
    %12 = vector.load %arg2[%c0_18, %c0_19, %c0_20, %c1] : memref<1x1x20x20xf32, #tpu.memory_space<vmem>>, vector<1x1x16x16xf32>
    %13 = vector.shape_cast %12 : vector<1x1x16x16xf32> to vector<16x16xf32>
    %14 = arith.maximumf %8, %13 : vector<16x16xf32>
    %c0_21 = arith.constant 0 : index
    %c0_22 = arith.constant 0 : index
    %c0_23 = arith.constant 0 : index
    %c1_24 = arith.constant 1 : index
    %15 = vector.load %arg3[%c0_21, %c0_22, %c0_23, %c1_24] : memref<1x1x20x20xf32, #tpu.memory_space<vmem>>, vector<1x1x16x16xf32>
    %16 = vector.shape_cast %15 : vector<1x1x16x16xf32> to vector<16x16xf32>
    %17 = arith.minimumf %11, %16 : vector<16x16xf32>
    %c0_25 = arith.constant 0 : index
    %c0_26 = arith.constant 0 : index
    %c0_27 = arith.constant 0 : index
    %c2_28 = arith.constant 2 : index
    %18 = vector.load %arg2[%c0_25, %c0_26, %c0_27, %c2_28] : memref<1x1x20x20xf32, #tpu.memory_space<vmem>>, vector<1x1x16x16xf32>
    %19 = vector.shape_cast %18 : vector<1x1x16x16xf32> to vector<16x16xf32>
    %20 = arith.maximumf %14, %19 : vector<16x16xf32>
    %c0_29 = arith.constant 0 : index
    %c0_30 = arith.constant 0 : index
    %c0_31 = arith.constant 0 : index
    %c2_32 = arith.constant 2 : index
    %21 = vector.load %arg3[%c0_29, %c0_30, %c0_31, %c2_32] : memref<1x1x20x20xf32, #tpu.memory_space<vmem>>, vector<1x1x16x16xf32>
    %22 = vector.shape_cast %21 : vector<1x1x16x16xf32> to vector<16x16xf32>
    %23 = arith.minimumf %17, %22 : vector<16x16xf32>
    %c0_33 = arith.constant 0 : index
    %c0_34 = arith.constant 0 : index
    %c0_35 = arith.constant 0 : index
    %c3 = arith.constant 3 : index
    %24 = vector.load %arg2[%c0_33, %c0_34, %c0_35, %c3] : memref<1x1x20x20xf32, #tpu.memory_space<vmem>>, vector<1x1x16x16xf32>
    %25 = vector.shape_cast %24 : vector<1x1x16x16xf32> to vector<16x16xf32>
    %26 = arith.maximumf %20, %25 : vector<16x16xf32>
    %c0_36 = arith.constant 0 : index
    %c0_37 = arith.constant 0 : index
    %c0_38 = arith.constant 0 : index
    %c3_39 = arith.constant 3 : index
    %27 = vector.load %arg3[%c0_36, %c0_37, %c0_38, %c3_39] : memref<1x1x20x20xf32, #tpu.memory_space<vmem>>, vector<1x1x16x16xf32>
    %28 = vector.shape_cast %27 : vector<1x1x16x16xf32> to vector<16x16xf32>
    %29 = arith.minimumf %23, %28 : vector<16x16xf32>
    %c0_40 = arith.constant 0 : index
    %c0_41 = arith.constant 0 : index
    %c0_42 = arith.constant 0 : index
    %c4 = arith.constant 4 : index
    %30 = vector.load %arg2[%c0_40, %c0_41, %c0_42, %c4] : memref<1x1x20x20xf32, #tpu.memory_space<vmem>>, vector<1x1x16x16xf32>
    %31 = vector.shape_cast %30 : vector<1x1x16x16xf32> to vector<16x16xf32>
    %32 = arith.maximumf %26, %31 : vector<16x16xf32>
    %c0_43 = arith.constant 0 : index
    %c0_44 = arith.constant 0 : index
    %c0_45 = arith.constant 0 : index
    %c4_46 = arith.constant 4 : index
    %33 = vector.load %arg3[%c0_43, %c0_44, %c0_45, %c4_46] : memref<1x1x20x20xf32, #tpu.memory_space<vmem>>, vector<1x1x16x16xf32>
    %34 = vector.shape_cast %33 : vector<1x1x16x16xf32> to vector<16x16xf32>
    %35 = arith.minimumf %29, %34 : vector<16x16xf32>
    %c0_47 = arith.constant 0 : index
    %c0_48 = arith.constant 0 : index
    %c1_49 = arith.constant 1 : index
    %c0_50 = arith.constant 0 : index
    %36 = vector.load %arg2[%c0_47, %c0_48, %c1_49, %c0_50] : memref<1x1x20x20xf32, #tpu.memory_space<vmem>>, vector<1x1x16x16xf32>
    %37 = vector.shape_cast %36 : vector<1x1x16x16xf32> to vector<16x16xf32>
    %38 = arith.maximumf %32, %37 : vector<16x16xf32>
    %c0_51 = arith.constant 0 : index
    %c0_52 = arith.constant 0 : index
    %c1_53 = arith.constant 1 : index
    %c0_54 = arith.constant 0 : index
    %39 = vector.load %arg3[%c0_51, %c0_52, %c1_53, %c0_54] : memref<1x1x20x20xf32, #tpu.memory_space<vmem>>, vector<1x1x16x16xf32>
    %40 = vector.shape_cast %39 : vector<1x1x16x16xf32> to vector<16x16xf32>
    %41 = arith.minimumf %35, %40 : vector<16x16xf32>
    %c0_55 = arith.constant 0 : index
    %c0_56 = arith.constant 0 : index
    %c1_57 = arith.constant 1 : index
    %c1_58 = arith.constant 1 : index
    %42 = vector.load %arg2[%c0_55, %c0_56, %c1_57, %c1_58] : memref<1x1x20x20xf32, #tpu.memory_space<vmem>>, vector<1x1x16x16xf32>
    %43 = vector.shape_cast %42 : vector<1x1x16x16xf32> to vector<16x16xf32>
    %44 = arith.maximumf %38, %43 : vector<16x16xf32>
    %c0_59 = arith.constant 0 : index
    %c0_60 = arith.constant 0 : index
    %c1_61 = arith.constant 1 : index
    %c1_62 = arith.constant 1 : index
    %45 = vector.load %arg3[%c0_59, %c0_60, %c1_61, %c1_62] : memref<1x1x20x20xf32, #tpu.memory_space<vmem>>, vector<1x1x16x16xf32>
    %46 = vector.shape_cast %45 : vector<1x1x16x16xf32> to vector<16x16xf32>
    %47 = arith.minimumf %41, %46 : vector<16x16xf32>
    %c0_63 = arith.constant 0 : index
    %c0_64 = arith.constant 0 : index
    %c1_65 = arith.constant 1 : index
    %c2_66 = arith.constant 2 : index
    %48 = vector.load %arg2[%c0_63, %c0_64, %c1_65, %c2_66] : memref<1x1x20x20xf32, #tpu.memory_space<vmem>>, vector<1x1x16x16xf32>
    %49 = vector.shape_cast %48 : vector<1x1x16x16xf32> to vector<16x16xf32>
    %50 = arith.maximumf %44, %49 : vector<16x16xf32>
    %c0_67 = arith.constant 0 : index
    %c0_68 = arith.constant 0 : index
    %c1_69 = arith.constant 1 : index
    %c2_70 = arith.constant 2 : index
    %51 = vector.load %arg3[%c0_67, %c0_68, %c1_69, %c2_70] : memref<1x1x20x20xf32, #tpu.memory_space<vmem>>, vector<1x1x16x16xf32>
    %52 = vector.shape_cast %51 : vector<1x1x16x16xf32> to vector<16x16xf32>
    %53 = arith.minimumf %47, %52 : vector<16x16xf32>
    %c0_71 = arith.constant 0 : index
    %c0_72 = arith.constant 0 : index
    %c1_73 = arith.constant 1 : index
    %c3_74 = arith.constant 3 : index
    %54 = vector.load %arg2[%c0_71, %c0_72, %c1_73, %c3_74] : memref<1x1x20x20xf32, #tpu.memory_space<vmem>>, vector<1x1x16x16xf32>
    %55 = vector.shape_cast %54 : vector<1x1x16x16xf32> to vector<16x16xf32>
    %56 = arith.maximumf %50, %55 : vector<16x16xf32>
    %c0_75 = arith.constant 0 : index
    %c0_76 = arith.constant 0 : index
    %c1_77 = arith.constant 1 : index
    %c3_78 = arith.constant 3 : index
    %57 = vector.load %arg3[%c0_75, %c0_76, %c1_77, %c3_78] : memref<1x1x20x20xf32, #tpu.memory_space<vmem>>, vector<1x1x16x16xf32>
    %58 = vector.shape_cast %57 : vector<1x1x16x16xf32> to vector<16x16xf32>
    %59 = arith.minimumf %53, %58 : vector<16x16xf32>
    %c0_79 = arith.constant 0 : index
    %c0_80 = arith.constant 0 : index
    %c1_81 = arith.constant 1 : index
    %c4_82 = arith.constant 4 : index
    %60 = vector.load %arg2[%c0_79, %c0_80, %c1_81, %c4_82] : memref<1x1x20x20xf32, #tpu.memory_space<vmem>>, vector<1x1x16x16xf32>
    %61 = vector.shape_cast %60 : vector<1x1x16x16xf32> to vector<16x16xf32>
    %62 = arith.maximumf %56, %61 : vector<16x16xf32>
    %c0_83 = arith.constant 0 : index
    %c0_84 = arith.constant 0 : index
    %c1_85 = arith.constant 1 : index
    %c4_86 = arith.constant 4 : index
    %63 = vector.load %arg3[%c0_83, %c0_84, %c1_85, %c4_86] : memref<1x1x20x20xf32, #tpu.memory_space<vmem>>, vector<1x1x16x16xf32>
    %64 = vector.shape_cast %63 : vector<1x1x16x16xf32> to vector<16x16xf32>
    %65 = arith.minimumf %59, %64 : vector<16x16xf32>
    %c0_87 = arith.constant 0 : index
    %c0_88 = arith.constant 0 : index
    %c2_89 = arith.constant 2 : index
    %c0_90 = arith.constant 0 : index
    %66 = vector.load %arg2[%c0_87, %c0_88, %c2_89, %c0_90] : memref<1x1x20x20xf32, #tpu.memory_space<vmem>>, vector<1x1x16x16xf32>
    %67 = vector.shape_cast %66 : vector<1x1x16x16xf32> to vector<16x16xf32>
    %68 = arith.maximumf %62, %67 : vector<16x16xf32>
    %c0_91 = arith.constant 0 : index
    %c0_92 = arith.constant 0 : index
    %c2_93 = arith.constant 2 : index
    %c0_94 = arith.constant 0 : index
    %69 = vector.load %arg3[%c0_91, %c0_92, %c2_93, %c0_94] : memref<1x1x20x20xf32, #tpu.memory_space<vmem>>, vector<1x1x16x16xf32>
    %70 = vector.shape_cast %69 : vector<1x1x16x16xf32> to vector<16x16xf32>
    %71 = arith.minimumf %65, %70 : vector<16x16xf32>
    %c0_95 = arith.constant 0 : index
    %c0_96 = arith.constant 0 : index
    %c2_97 = arith.constant 2 : index
    %c1_98 = arith.constant 1 : index
    %72 = vector.load %arg2[%c0_95, %c0_96, %c2_97, %c1_98] : memref<1x1x20x20xf32, #tpu.memory_space<vmem>>, vector<1x1x16x16xf32>
    %73 = vector.shape_cast %72 : vector<1x1x16x16xf32> to vector<16x16xf32>
    %74 = arith.maximumf %68, %73 : vector<16x16xf32>
    %c0_99 = arith.constant 0 : index
    %c0_100 = arith.constant 0 : index
    %c2_101 = arith.constant 2 : index
    %c1_102 = arith.constant 1 : index
    %75 = vector.load %arg3[%c0_99, %c0_100, %c2_101, %c1_102] : memref<1x1x20x20xf32, #tpu.memory_space<vmem>>, vector<1x1x16x16xf32>
    %76 = vector.shape_cast %75 : vector<1x1x16x16xf32> to vector<16x16xf32>
    %77 = arith.minimumf %71, %76 : vector<16x16xf32>
    %c0_103 = arith.constant 0 : index
    %c0_104 = arith.constant 0 : index
    %c2_105 = arith.constant 2 : index
    %c3_106 = arith.constant 3 : index
    %78 = vector.load %arg2[%c0_103, %c0_104, %c2_105, %c3_106] : memref<1x1x20x20xf32, #tpu.memory_space<vmem>>, vector<1x1x16x16xf32>
    %79 = vector.shape_cast %78 : vector<1x1x16x16xf32> to vector<16x16xf32>
    %80 = arith.maximumf %74, %79 : vector<16x16xf32>
    %c0_107 = arith.constant 0 : index
    %c0_108 = arith.constant 0 : index
    %c2_109 = arith.constant 2 : index
    %c3_110 = arith.constant 3 : index
    %81 = vector.load %arg3[%c0_107, %c0_108, %c2_109, %c3_110] : memref<1x1x20x20xf32, #tpu.memory_space<vmem>>, vector<1x1x16x16xf32>
    %82 = vector.shape_cast %81 : vector<1x1x16x16xf32> to vector<16x16xf32>
    %83 = arith.minimumf %77, %82 : vector<16x16xf32>
    %c0_111 = arith.constant 0 : index
    %c0_112 = arith.constant 0 : index
    %c2_113 = arith.constant 2 : index
    %c4_114 = arith.constant 4 : index
    %84 = vector.load %arg2[%c0_111, %c0_112, %c2_113, %c4_114] : memref<1x1x20x20xf32, #tpu.memory_space<vmem>>, vector<1x1x16x16xf32>
    %85 = vector.shape_cast %84 : vector<1x1x16x16xf32> to vector<16x16xf32>
    %86 = arith.maximumf %80, %85 : vector<16x16xf32>
    %c0_115 = arith.constant 0 : index
    %c0_116 = arith.constant 0 : index
    %c2_117 = arith.constant 2 : index
    %c4_118 = arith.constant 4 : index
    %87 = vector.load %arg3[%c0_115, %c0_116, %c2_117, %c4_118] : memref<1x1x20x20xf32, #tpu.memory_space<vmem>>, vector<1x1x16x16xf32>
    %88 = vector.shape_cast %87 : vector<1x1x16x16xf32> to vector<16x16xf32>
    %89 = arith.minimumf %83, %88 : vector<16x16xf32>
    %c0_119 = arith.constant 0 : index
    %c0_120 = arith.constant 0 : index
    %c3_121 = arith.constant 3 : index
    %c0_122 = arith.constant 0 : index
    %90 = vector.load %arg2[%c0_119, %c0_120, %c3_121, %c0_122] : memref<1x1x20x20xf32, #tpu.memory_space<vmem>>, vector<1x1x16x16xf32>
    %91 = vector.shape_cast %90 : vector<1x1x16x16xf32> to vector<16x16xf32>
    %92 = arith.maximumf %86, %91 : vector<16x16xf32>
    %c0_123 = arith.constant 0 : index
    %c0_124 = arith.constant 0 : index
    %c3_125 = arith.constant 3 : index
    %c0_126 = arith.constant 0 : index
    %93 = vector.load %arg3[%c0_123, %c0_124, %c3_125, %c0_126] : memref<1x1x20x20xf32, #tpu.memory_space<vmem>>, vector<1x1x16x16xf32>
    %94 = vector.shape_cast %93 : vector<1x1x16x16xf32> to vector<16x16xf32>
    %95 = arith.minimumf %89, %94 : vector<16x16xf32>
    %c0_127 = arith.constant 0 : index
    %c0_128 = arith.constant 0 : index
    %c3_129 = arith.constant 3 : index
    %c1_130 = arith.constant 1 : index
    %96 = vector.load %arg2[%c0_127, %c0_128, %c3_129, %c1_130] : memref<1x1x20x20xf32, #tpu.memory_space<vmem>>, vector<1x1x16x16xf32>
    %97 = vector.shape_cast %96 : vector<1x1x16x16xf32> to vector<16x16xf32>
    %98 = arith.maximumf %92, %97 : vector<16x16xf32>
    %c0_131 = arith.constant 0 : index
    %c0_132 = arith.constant 0 : index
    %c3_133 = arith.constant 3 : index
    %c1_134 = arith.constant 1 : index
    %99 = vector.load %arg3[%c0_131, %c0_132, %c3_133, %c1_134] : memref<1x1x20x20xf32, #tpu.memory_space<vmem>>, vector<1x1x16x16xf32>
    %100 = vector.shape_cast %99 : vector<1x1x16x16xf32> to vector<16x16xf32>
    %101 = arith.minimumf %95, %100 : vector<16x16xf32>
    %c0_135 = arith.constant 0 : index
    %c0_136 = arith.constant 0 : index
    %c3_137 = arith.constant 3 : index
    %c2_138 = arith.constant 2 : index
    %102 = vector.load %arg2[%c0_135, %c0_136, %c3_137, %c2_138] : memref<1x1x20x20xf32, #tpu.memory_space<vmem>>, vector<1x1x16x16xf32>
    %103 = vector.shape_cast %102 : vector<1x1x16x16xf32> to vector<16x16xf32>
    %104 = arith.maximumf %98, %103 : vector<16x16xf32>
    %c0_139 = arith.constant 0 : index
    %c0_140 = arith.constant 0 : index
    %c3_141 = arith.constant 3 : index
    %c2_142 = arith.constant 2 : index
    %105 = vector.load %arg3[%c0_139, %c0_140, %c3_141, %c2_142] : memref<1x1x20x20xf32, #tpu.memory_space<vmem>>, vector<1x1x16x16xf32>
    %106 = vector.shape_cast %105 : vector<1x1x16x16xf32> to vector<16x16xf32>
    %107 = arith.minimumf %101, %106 : vector<16x16xf32>
    %c0_143 = arith.constant 0 : index
    %c0_144 = arith.constant 0 : index
    %c3_145 = arith.constant 3 : index
    %c3_146 = arith.constant 3 : index
    %108 = vector.load %arg2[%c0_143, %c0_144, %c3_145, %c3_146] : memref<1x1x20x20xf32, #tpu.memory_space<vmem>>, vector<1x1x16x16xf32>
    %109 = vector.shape_cast %108 : vector<1x1x16x16xf32> to vector<16x16xf32>
    %110 = arith.maximumf %104, %109 : vector<16x16xf32>
    %c0_147 = arith.constant 0 : index
    %c0_148 = arith.constant 0 : index
    %c3_149 = arith.constant 3 : index
    %c3_150 = arith.constant 3 : index
    %111 = vector.load %arg3[%c0_147, %c0_148, %c3_149, %c3_150] : memref<1x1x20x20xf32, #tpu.memory_space<vmem>>, vector<1x1x16x16xf32>
    %112 = vector.shape_cast %111 : vector<1x1x16x16xf32> to vector<16x16xf32>
    %113 = arith.minimumf %107, %112 : vector<16x16xf32>
    %c0_151 = arith.constant 0 : index
    %c0_152 = arith.constant 0 : index
    %c3_153 = arith.constant 3 : index
    %c4_154 = arith.constant 4 : index
    %114 = vector.load %arg2[%c0_151, %c0_152, %c3_153, %c4_154] : memref<1x1x20x20xf32, #tpu.memory_space<vmem>>, vector<1x1x16x16xf32>
    %115 = vector.shape_cast %114 : vector<1x1x16x16xf32> to vector<16x16xf32>
    %116 = arith.maximumf %110, %115 : vector<16x16xf32>
    %c0_155 = arith.constant 0 : index
    %c0_156 = arith.constant 0 : index
    %c3_157 = arith.constant 3 : index
    %c4_158 = arith.constant 4 : index
    %117 = vector.load %arg3[%c0_155, %c0_156, %c3_157, %c4_158] : memref<1x1x20x20xf32, #tpu.memory_space<vmem>>, vector<1x1x16x16xf32>
    %118 = vector.shape_cast %117 : vector<1x1x16x16xf32> to vector<16x16xf32>
    %119 = arith.minimumf %113, %118 : vector<16x16xf32>
    %c0_159 = arith.constant 0 : index
    %c0_160 = arith.constant 0 : index
    %c4_161 = arith.constant 4 : index
    %c0_162 = arith.constant 0 : index
    %120 = vector.load %arg2[%c0_159, %c0_160, %c4_161, %c0_162] : memref<1x1x20x20xf32, #tpu.memory_space<vmem>>, vector<1x1x16x16xf32>
    %121 = vector.shape_cast %120 : vector<1x1x16x16xf32> to vector<16x16xf32>
    %122 = arith.maximumf %116, %121 : vector<16x16xf32>
    %c0_163 = arith.constant 0 : index
    %c0_164 = arith.constant 0 : index
    %c4_165 = arith.constant 4 : index
    %c0_166 = arith.constant 0 : index
    %123 = vector.load %arg3[%c0_163, %c0_164, %c4_165, %c0_166] : memref<1x1x20x20xf32, #tpu.memory_space<vmem>>, vector<1x1x16x16xf32>
    %124 = vector.shape_cast %123 : vector<1x1x16x16xf32> to vector<16x16xf32>
    %125 = arith.minimumf %119, %124 : vector<16x16xf32>
    %c0_167 = arith.constant 0 : index
    %c0_168 = arith.constant 0 : index
    %c4_169 = arith.constant 4 : index
    %c1_170 = arith.constant 1 : index
    %126 = vector.load %arg2[%c0_167, %c0_168, %c4_169, %c1_170] : memref<1x1x20x20xf32, #tpu.memory_space<vmem>>, vector<1x1x16x16xf32>
    %127 = vector.shape_cast %126 : vector<1x1x16x16xf32> to vector<16x16xf32>
    %128 = arith.maximumf %122, %127 : vector<16x16xf32>
    %c0_171 = arith.constant 0 : index
    %c0_172 = arith.constant 0 : index
    %c4_173 = arith.constant 4 : index
    %c1_174 = arith.constant 1 : index
    %129 = vector.load %arg3[%c0_171, %c0_172, %c4_173, %c1_174] : memref<1x1x20x20xf32, #tpu.memory_space<vmem>>, vector<1x1x16x16xf32>
    %130 = vector.shape_cast %129 : vector<1x1x16x16xf32> to vector<16x16xf32>
    %131 = arith.minimumf %125, %130 : vector<16x16xf32>
    %c0_175 = arith.constant 0 : index
    %c0_176 = arith.constant 0 : index
    %c4_177 = arith.constant 4 : index
    %c2_178 = arith.constant 2 : index
    %132 = vector.load %arg2[%c0_175, %c0_176, %c4_177, %c2_178] : memref<1x1x20x20xf32, #tpu.memory_space<vmem>>, vector<1x1x16x16xf32>
    %133 = vector.shape_cast %132 : vector<1x1x16x16xf32> to vector<16x16xf32>
    %134 = arith.maximumf %128, %133 : vector<16x16xf32>
    %c0_179 = arith.constant 0 : index
    %c0_180 = arith.constant 0 : index
    %c4_181 = arith.constant 4 : index
    %c2_182 = arith.constant 2 : index
    %135 = vector.load %arg3[%c0_179, %c0_180, %c4_181, %c2_182] : memref<1x1x20x20xf32, #tpu.memory_space<vmem>>, vector<1x1x16x16xf32>
    %136 = vector.shape_cast %135 : vector<1x1x16x16xf32> to vector<16x16xf32>
    %137 = arith.minimumf %131, %136 : vector<16x16xf32>
    %c0_183 = arith.constant 0 : index
    %c0_184 = arith.constant 0 : index
    %c4_185 = arith.constant 4 : index
    %c3_186 = arith.constant 3 : index
    %138 = vector.load %arg2[%c0_183, %c0_184, %c4_185, %c3_186] : memref<1x1x20x20xf32, #tpu.memory_space<vmem>>, vector<1x1x16x16xf32>
    %139 = vector.shape_cast %138 : vector<1x1x16x16xf32> to vector<16x16xf32>
    %140 = arith.maximumf %134, %139 : vector<16x16xf32>
    %c0_187 = arith.constant 0 : index
    %c0_188 = arith.constant 0 : index
    %c4_189 = arith.constant 4 : index
    %c3_190 = arith.constant 3 : index
    %141 = vector.load %arg3[%c0_187, %c0_188, %c4_189, %c3_190] : memref<1x1x20x20xf32, #tpu.memory_space<vmem>>, vector<1x1x16x16xf32>
    %142 = vector.shape_cast %141 : vector<1x1x16x16xf32> to vector<16x16xf32>
    %143 = arith.minimumf %137, %142 : vector<16x16xf32>
    %c0_191 = arith.constant 0 : index
    %c0_192 = arith.constant 0 : index
    %c4_193 = arith.constant 4 : index
    %c4_194 = arith.constant 4 : index
    %144 = vector.load %arg2[%c0_191, %c0_192, %c4_193, %c4_194] : memref<1x1x20x20xf32, #tpu.memory_space<vmem>>, vector<1x1x16x16xf32>
    %145 = vector.shape_cast %144 : vector<1x1x16x16xf32> to vector<16x16xf32>
    %146 = arith.maximumf %140, %145 : vector<16x16xf32>
    %c0_195 = arith.constant 0 : index
    %c0_196 = arith.constant 0 : index
    %c4_197 = arith.constant 4 : index
    %c4_198 = arith.constant 4 : index
    %147 = vector.load %arg3[%c0_195, %c0_196, %c4_197, %c4_198] : memref<1x1x20x20xf32, #tpu.memory_space<vmem>>, vector<1x1x16x16xf32>
    %148 = vector.shape_cast %147 : vector<1x1x16x16xf32> to vector<16x16xf32>
    %149 = arith.minimumf %143, %148 : vector<16x16xf32>
    %150 = arith.subf %146, %149 : vector<16x16xf32>
    %cst = arith.constant 0.000000e+00 : f32
    %151 = vector.broadcast %cst : f32 to vector<16x16xf32>
    %152 = arith.maximumf %1, %151 : vector<16x16xf32>
    %153 = arith.mulf %1, %150 : vector<16x16xf32>
    %154 = arith.subf %152, %153 : vector<16x16xf32>
    %155 = math.absf %1 : vector<16x16xf32>
    %cst_199 = arith.constant 0.000000e+00 : f32
    %156 = vector.broadcast %cst_199 : f32 to vector<16x16xf32>
    %157 = arith.subf %156, %155 : vector<16x16xf32>
    %158 = math.exp %157 : vector<16x16xf32>
    %cst_200 = arith.constant 1.000000e+00 : f32
    %159 = vector.broadcast %cst_200 : f32 to vector<16x16xf32>
    %160 = arith.addf %159, %158 : vector<16x16xf32>
    %161 = math.log %160 : vector<16x16xf32>
    %162 = arith.addf %154, %161 : vector<16x16xf32>
    %cst_201 = arith.constant dense<0.000000e+00> : vector<16xf32>
    %163 = vector.multi_reduction <add>, %162, %cst_201 [0] : vector<16x16xf32> to vector<16xf32>
    %164 = vector.shape_cast %163 : vector<16xf32> to vector<1x16xf32>
    %c0_202 = arith.constant 0 : index
    %c0_203 = arith.constant 0 : index
    %c0_204 = arith.constant 0 : index
    %165 = vector.load %arg4[%c0_202, %c0_203, %c0_204] : memref<1x1x16xf32, #tpu.memory_space<vmem>>, vector<1x1x16xf32>
    %166 = vector.shape_cast %165 : vector<1x1x16xf32> to vector<1x16xf32>
    %167 = vector.shape_cast %164 : vector<1x16xf32> to vector<1x1x16xf32>
    tpu.vector_store %arg4[%c0_202, %c0_203, %c0_204], %167 {strides = array<i32>} : memref<1x1x16xf32, #tpu.memory_space<vmem>>, vector<1x1x16xf32>,
    return
  }
  func.func @transform_0(%arg0: i32) -> (i32, i32, i32, i32) {
    %c0_i32 = arith.constant 0 : i32
    %c0_i32_0 = arith.constant 0 : i32
    %c0_i32_1 = arith.constant 0 : i32
    %c0_i32_2 = arith.constant 0 : i32
    return %arg0, %c0_i32, %c0_i32_0, %c0_i32_1 : i32, i32, i32, i32
  }
  func.func @transform_1(%arg0: i32) -> (i32, i32, i32, i32) {
    %c0_i32 = arith.constant 0 : i32
    %c0_i32_0 = arith.constant 0 : i32
    %c0_i32_1 = arith.constant 0 : i32
    %c0_i32_2 = arith.constant 0 : i32
    return %arg0, %c0_i32, %c0_i32_0, %c0_i32_1 : i32, i32, i32, i32
  }
  func.func @transform_2(%arg0: i32) -> (i32, i32, i32, i32) {
    %c0_i32 = arith.constant 0 : i32
    %c0_i32_0 = arith.constant 0 : i32
    %c0_i32_1 = arith.constant 0 : i32
    %c0_i32_2 = arith.constant 0 : i32
    return %arg0, %c0_i32, %c0_i32_0, %c0_i32_1 : i32, i32, i32, i32
  }
  func.func @transform_3(%arg0: i32) -> (i32, i32, i32) {
    %c0_i32 = arith.constant 0 : i32
    %c0_i32_0 = arith.constant 0 : i32
    %c0_i32_1 = arith.constant 0 : i32
    return %arg0, %c0_i32, %c0_i32_0 : i32, i32, i32
  }
}

</mosaic_0001>

<bundles_post_ra>
// kernel: compute_loss.3
= control target key start
LH: loop header
LB: loop body
LE: loop exit
PB: predicated region body
PF: predicated region fallthrough
CT: control target
= control target key end

     0   :  { %s765_s12 = smov 0   ;;  %s1011_s0 = inlined_call_operand.vmem [shape: f32[2,1,16,16], index: 0, kind: input, shape index: {}]   ;;  %s1012_s1 = inlined_call_operand.vmem [shape: f32[2,1,20,20], index: 1, kind: input, shape index: {}]   ;;  %s1013_s2 = inlined_call_operand.vmem [shape: f32[2,1,20,20], index: 2, kind: input, shape index: {}]   ;;  %s1014_s3 = inlined_call_operand.vmem [shape: f32[2,1,16], index: 3, kind: output, shape index: {}]  }
   0x1 LB: > { %s700_s13 = sadd.s32 4294967295, %s739_s12   ;;  %p704_p0 = scmp.ge.s32.totalorder %s739_s12, 1  ;;  %s739_s12 = sphi %s765_s12, %s13_s12  }
   0x2   : > { %p157_p1 = scmp.lt.s32.totalorder %s739_s12, 3 }
   0x4   : > { %p158_p2 = pnand %p704_p0, %p157_p1 }
   0x5   : > { %p189_p3 = scmp.lt.s32.totalorder (!%p158_p2), %s700_s13, 1  ;;  %s741_s21 = smov (!%p158_p2), 2   ;;  %vm617_vm0 = vcmask (!%p158_p2), 130048   ;;  %vm627_vm1 = vcmask (!%p158_p2), 122880  }
   0x6   : > { %161 = sbr.rel (%p158_p2) target bundleno = 431 (0x1af), region = 32  ;;  %s742_s22 = smov (!%p158_p2), 1  }
   0x7   : > { %s743_s23 = smov (!%p158_p2), 127   ;;  %s744_s24 = smov (!%p158_p2), 126  }
   0xd   : > { %s1016_s13 = smov (!%p189_p3, %s700_s13), 1 }
   0xe   : > { %s712_s14 = smul.u32 24, %s1016_s13  ;;  %s711_s25 = sshll.u32 %s1016_s13, 4 }
   0xf   : > { %s193_s28 = scalar_lea.vmem %s1011_s0, %s711_s25  ;;  %s206_s4 = scalar_lea.vmem %s1014_s3, %s1016_s13 }
  0x10   : > { %s779_s17 = scalar_lea.vmem %s1013_s2, %s712_s14  ;;  %s784_s20 = scalar_lea.vmem %s1012_s1, %s712_s14 }
  0x11   : > { %v787_v0 = vld [vmem:[%s779_s17] sm:$0xff]  ;;  %v797_v2 = vld [vmem:[%s779_s17 + $0x8] sm:$0xff] }
  0x12   : > { %v790_v1 = vld [vmem:[%s784_s20] sm:$0xff]  ;;  %229 = vrot.lane.b32.xlu1 %v787_v0, %s741_s21  ;;  %v800_v3 = vld [vmem:[%s784_s20 + $0x8] sm:$0xff] }
  0x13   : > { %217 = vrot.lane.b32.xlu0 %v790_v1, %s741_s21  ;;  %v831_v4 = vld [vmem:[%s784_s20 + $0x9] sm:$0xff]  ;;  %v834_v5 = vld [vmem:[%s784_s20 + $0x1] sm:$0xff] }
  0x14   : > { %v841_v6 = vld [vmem:[%s779_s17 + $0x9] sm:$0xff]  ;;  %v844_v7 = vld [vmem:[%s779_s17 + $0x1] sm:$0xff] }
  0x15   : > { %v210_v8 = vld [vmem:[%s784_s20 + $0xa] sm:$0xff]  ;;  %v209_v9 = vld [vmem:[%s784_s20 + $0x2] sm:$0xff] }
  0x16   : > { %231 = vrot.lane.b32.xlu1 %v797_v2, %s741_s21  ;;  %v212_v10 = vld [vmem:[%s779_s17 + $0xa] sm:$0xff]  ;;  %v211_v11 = vld [vmem:[%s779_s17 + $0x2] sm:$0xff] }
  0x17   : > { %219 = vrot.lane.b32.xlu0 %v800_v3, %s741_s21  ;;  %v895_v12 = vld [vmem:[%s784_s20 + $0xb] sm:$0xff]  ;;  %v898_v13 = vld [vmem:[%s784_s20 + $0x3] sm:$0xff] }
  0x18   : > { %v905_v14 = vld [vmem:[%s779_s17 + $0xb] sm:$0xff]  ;;  %v908_v15 = vld [vmem:[%s779_s17 + $0x3] sm:$0xff] }
  0x19   : > { %v939_v28 = vld [vmem:[%s784_s20 + $0xc] sm:$0xff]  ;;  %v942_v29 = vld [vmem:[%s784_s20 + $0x4] sm:$0xff] }
  0x1a   : > { %239 = vrot.lane.b32.xlu1 %v800_v3, %s742_s22  ;;  %v951_v36 = vld [vmem:[%s779_s17 + $0xc] sm:$0xff]  ;;  %v954_v37 = vld [vmem:[%s779_s17 + $0x4] sm:$0xff] }
  0x1b   : > { %237 = vrot.lane.b32.xlu0 %v790_v1, %s742_s22 }
  0x1e   : > { %247 = vrot.lane.b32.xlu1 %v797_v2, %s742_s22 }
  0x1f   : > { %245 = vrot.lane.b32.xlu0 %v787_v0, %s742_s22 }
  0x22   : > { %259 = vrot.lane.b32.xlu1 %v800_v3, %s743_s23 }
  0x23   : > { %257 = vrot.lane.b32.xlu0 %v790_v1, %s743_s23 }
  0x26   : > { %267 = vrot.lane.b32.xlu1 %v797_v2, %s743_s23 }
  0x27   : > { %265 = vrot.lane.b32.xlu0 %v787_v0, %s743_s23 }
  0x2a   : > { %275 = vrot.lane.b32.xlu1 %v800_v3, %s744_s24 }
  0x2b   : > { %273 = vrot.lane.b32.xlu0 %v790_v1, %s744_s24 }
  0x2e   : > { %283 = vrot.lane.b32.xlu1 %v797_v2, %s744_s24 }
  0x2f   : > { %281 = vrot.lane.b32.xlu0 %v787_v0, %s744_s24 }
  0x32   : > { %295 = vrot.lane.b32.xlu1 %v831_v4, %s741_s21 }
  0x33   : > { %293 = vrot.lane.b32.xlu0 %v834_v5, %s741_s21 }
  0x36   : > { %307 = vrot.lane.b32.xlu1 %v841_v6, %s741_s21 }
  0x37   : > { %305 = vrot.lane.b32.xlu0 %v844_v7, %s741_s21 }
  0x3a   : > { %315 = vrot.lane.b32.xlu1 %v831_v4, %s742_s22 }
  0x3b   : > { %313 = vrot.lane.b32.xlu0 %v834_v5, %s742_s22 }
  0x3e   : > { %323 = vrot.lane.b32.xlu1 %v841_v6, %s742_s22 }
  0x3f   : > { %321 = vrot.lane.b32.xlu0 %v844_v7, %s742_s22 }
  0x42   : > { %335 = vrot.lane.b32.xlu1 %v831_v4, %s743_s23 }
  0x43   : > { %333 = vrot.lane.b32.xlu0 %v834_v5, %s743_s23 }
  0x46   : > { %343 = vrot.lane.b32.xlu1 %v841_v6, %s743_s23 }
  0x47   : > { %341 = vrot.lane.b32.xlu0 %v844_v7, %s743_s23 }
  0x4a   : > { %351 = vrot.lane.b32.xlu1 %v831_v4, %s744_s24 }
  0x4b   : > { %349 = vrot.lane.b32.xlu0 %v834_v5, %s744_s24 }
  0x4e   : > { %359 = vrot.lane.b32.xlu1 %v841_v6, %s744_s24 }
  0x4f   : > { %357 = vrot.lane.b32.xlu0 %v844_v7, %s744_s24 }
  0x52   : > { %369 = vrot.lane.b32.xlu1 %v210_v8, %s741_s21 }
  0x53   : > { %367 = vrot.lane.b32.xlu0 %v209_v9, %s741_s21 }
  0x56   : > { %379 = vrot.lane.b32.xlu1 %v212_v10, %s741_s21 }
  0x57   : > { %377 = vrot.lane.b32.xlu0 %v211_v11, %s741_s21 }
  0x5a   : > { %387 = vrot.lane.b32.xlu1 %v210_v8, %s742_s22 }
  0x5b   : > { %385 = vrot.lane.b32.xlu0 %v209_v9, %s742_s22 }
  0x5e   : > { %395 = vrot.lane.b32.xlu1 %v212_v10, %s742_s22 }
  0x5f   : > { %393 = vrot.lane.b32.xlu0 %v211_v11, %s742_s22 }
  0x62   : > { %403 = vrot.lane.b32.xlu1 %v210_v8, %s743_s23 }
  0x63   : > { %401 = vrot.lane.b32.xlu0 %v209_v9, %s743_s23 }
  0x66   : > { %411 = vrot.lane.b32.xlu1 %v212_v10, %s743_s23 }
  0x67   : > { %409 = vrot.lane.b32.xlu0 %v211_v11, %s743_s23 }
  0x6a   : > { %419 = vrot.lane.b32.xlu1 %v210_v8, %s744_s24 }
  0x6b   : > { %417 = vrot.lane.b32.xlu0 %v209_v9, %s744_s24 }
  0x6e   : > { %427 = vrot.lane.b32.xlu1 %v212_v10, %s744_s24 }
  0x6f   : > { %425 = vrot.lane.b32.xlu0 %v211_v11, %s744_s24 }
  0x72   : > { %439 = vrot.lane.b32.xlu1 %v895_v12, %s741_s21 }
  0x73   : > { %437 = vrot.lane.b32.xlu0 %v898_v13, %s741_s21 }
  0x76   : > { %451 = vrot.lane.b32.xlu1 %v905_v14, %s741_s21 }
  0x77   : > { %449 = vrot.lane.b32.xlu0 %v908_v15, %s741_s21 }
  0x7a   : > { %459 = vrot.lane.b32.xlu1 %v895_v12, %s742_s22 }
  0x7b   : > { %457 = vrot.lane.b32.xlu0 %v898_v13, %s742_s22 }
  0x7e   : > { %467 = vrot.lane.b32.xlu1 %v905_v14, %s742_s22 }
  0x7f   : > { %465 = vrot.lane.b32.xlu0 %v908_v15, %s742_s22 }
  0x82   : > { %479 = vrot.lane.b32.xlu1 %v895_v12, %s743_s23 }
  0x83   : > { %477 = vrot.lane.b32.xlu0 %v898_v13, %s743_s23 }
  0x84   : > { %v230_v16 = vpop.permute.xlu1 %229 }
  0x85   : > { %v218_v17 = vpop.permute.xlu0 %217  ;;  %v235_v18 = vmin.f32 %v211_v11, %v230_v16 }
  0x86   : > { %v223_v19 = vmax.f32 %v209_v9, %v218_v17  ;;  %487 = vrot.lane.b32.xlu1 %v905_v14, %s743_s23 }
  0x87   : > { %485 = vrot.lane.b32.xlu0 %v908_v15, %s743_s23 }
  0x88   : > { %v232_v20 = vpop.permute.xlu1 %231 }
  0x89   : > { %v220_v21 = vpop.permute.xlu0 %219  ;;  %v236_v22 = vmin.f32 %v212_v10, %v232_v20 }
  0x8a   : > { %v224_v23 = vmax.f32 %v210_v8, %v220_v21  ;;  %495 = vrot.lane.b32.xlu1 %v895_v12, %s744_s24 }
  0x8b   : > { %493 = vrot.lane.b32.xlu0 %v898_v13, %s744_s24 }
  0x8c   : > { %v240_v24 = vpop.permute.xlu1 %239 }
  0x8d   : > { %v238_v25 = vpop.permute.xlu0 %237  ;;  %v244_v26 = vmax.f32 %v224_v23, %v240_v24 }
  0x8e   : > { %v243_v27 = vmax.f32 %v223_v19, %v238_v25  ;;  %503 = vrot.lane.b32.xlu1 %v905_v14, %s744_s24 }
  0x8f   : > { %501 = vrot.lane.b32.xlu0 %v908_v15, %s744_s24  ;;  %v254_v34 = vmax.f32 %v244_v26, %v800_v3 }
  0x90   : > { %v248_v30 = vpop.permute.xlu1 %247  ;;  %v253_v35 = vmax.f32 %v243_v27, %v790_v1 }
  0x91   : > { %v246_v31 = vpop.permute.xlu0 %245  ;;  %v252_v32 = vmin.f32 %v236_v22, %v248_v30 }
  0x92   : > { %v251_v33 = vmin.f32 %v235_v18, %v246_v31  ;;  %515 = vrot.lane.b32.xlu1 %v939_v28, %s741_s21 }
  0x93   : > { %513 = vrot.lane.b32.xlu0 %v942_v29, %s741_s21  ;;  %v256_v42 = vmin.f32 %v252_v32, %v797_v2 }
  0x94   : > { %v260_v38 = vpop.permute.xlu1 %259  ;;  %v255_v43 = vmin.f32 %v251_v33, %v787_v0 }
  0x95   : > { %v258_v39 = vpop.permute.xlu0 %257  ;;  %v264_v40 = vmax.f32 %v254_v34, %v260_v38 }
  0x96   : > { %v263_v41 = vmax.f32 %v253_v35, %v258_v39  ;;  %527 = vrot.lane.b32.xlu1 %v951_v36, %s741_s21 }
  0x97   : > { %525 = vrot.lane.b32.xlu0 %v954_v37, %s741_s21 }
  0x98   : > { %v268_v44 = vpop.permute.xlu1 %267 }
  0x99   : > { %v266_v45 = vpop.permute.xlu0 %265  ;;  %v272_v46 = vmin.f32 %v256_v42, %v268_v44 }
  0x9a   : > { %v271_v47 = vmin.f32 %v255_v43, %v266_v45  ;;  %535 = vrot.lane.b32.xlu1 %v939_v28, %s742_s22 }
  0x9b   : > { %533 = vrot.lane.b32.xlu0 %v942_v29, %s742_s22 }
  0x9c   : > { %v276_v48 = vpop.permute.xlu1 %275 }
  0x9d   : > { %v274_v49 = vpop.permute.xlu0 %273  ;;  %v280_v50 = vmax.f32 %v264_v40, %v276_v48 }
  0x9e   : > { %v279_v51 = vmax.f32 %v263_v41, %v274_v49  ;;  %543 = vrot.lane.b32.xlu1 %v951_v36, %s742_s22 }
  0x9f   : > { %541 = vrot.lane.b32.xlu0 %v954_v37, %s742_s22 }
  0xa0   : > { %v284_v52 = vpop.permute.xlu1 %283 }
  0xa1   : > { %v282_v53 = vpop.permute.xlu0 %281  ;;  %v288_v54 = vmin.f32 %v272_v46, %v284_v52 }
  0xa2   : > { %v287_v55 = vmin.f32 %v271_v47, %v282_v53  ;;  %555 = vrot.lane.b32.xlu1 %v939_v28, %s743_s23 }
  0xa3   : > { %553 = vrot.lane.b32.xlu0 %v942_v29, %s743_s23 }
  0xa4   : > { %v296_v56 = vpop.permute.xlu1 %295 }
  0xa5   : > { %v294_v57 = vpop.permute.xlu0 %293  ;;  %v300_v58 = vmax.f32 %v280_v50, %v296_v56 }
  0xa6   : > { %v299_v59 = vmax.f32 %v279_v51, %v294_v57  ;;  %563 = vrot.lane.b32.xlu1 %v951_v36, %s743_s23 }
  0xa7   : > { %561 = vrot.lane.b32.xlu0 %v954_v37, %s743_s23 }
  0xa8   : > { %v308_v60 = vpop.permute.xlu1 %307 }
  0xa9   : > { %v306_v61 = vpop.permute.xlu0 %305  ;;  %v312_v62 = vmin.f32 %v288_v54, %v308_v60 }
  0xaa   : > { %v311_v63 = vmin.f32 %v287_v55, %v306_v61  ;;  %571 = vrot.lane.b32.xlu1 %v939_v28, %s744_s24 }
  0xab   : > { %569 = vrot.lane.b32.xlu0 %v942_v29, %s744_s24 }
  0xac   : > { %v316_v0 = vpop.permute.xlu1 %315 }
  0xad   : > { %v314_v1 = vpop.permute.xlu0 %313  ;;  %v320_v2 = vmax.f32 %v300_v58, %v316_v0 }
  0xae   : > { %v319_v3 = vmax.f32 %v299_v59, %v314_v1  ;;  %579 = vrot.lane.b32.xlu1 %v951_v36, %s744_s24 }
  0xaf   : > { %577 = vrot.lane.b32.xlu0 %v954_v37, %s744_s24  ;;  %v330_v16 = vmax.f32 %v320_v2, %v831_v4 }
  0xb0   : > { %v324_v8 = vpop.permute.xlu1 %323  ;;  %v329_v17 = vmax.f32 %v319_v3, %v834_v5 }
  0xb1   : > { %v322_v9 = vpop.permute.xlu0 %321  ;;  %v328_v10 = vmin.f32 %v312_v62, %v324_v8 }
  0xb2   : > { %v327_v11 = vmin.f32 %v311_v63, %v322_v9 }
  0xb3   : > { %v332_v22 = vmin.f32 %v328_v10, %v841_v6 }
  0xb4   : > { %v336_v18 = vpop.permute.xlu1 %335  ;;  %v331_v23 = vmin.f32 %v327_v11, %v844_v7 }
  0xb5   : > { %v334_v19 = vpop.permute.xlu0 %333  ;;  %v340_v20 = vmax.f32 %v330_v16, %v336_v18 }
  0xb6   : > { %v339_v21 = vmax.f32 %v329_v17, %v334_v19 }
  0xb8   : > { %v344_v24 = vpop.permute.xlu1 %343 }
  0xb9   : > { %v342_v25 = vpop.permute.xlu0 %341  ;;  %v348_v26 = vmin.f32 %v332_v22, %v344_v24 }
  0xba   : > { %v347_v27 = vmin.f32 %v331_v23, %v342_v25 }
  0xbc   : > { %v352_v30 = vpop.permute.xlu1 %351 }
  0xbd   : > { %v350_v31 = vpop.permute.xlu0 %349  ;;  %v356_v32 = vmax.f32 %v340_v20, %v352_v30 }
  0xbe   : > { %v355_v33 = vmax.f32 %v339_v21, %v350_v31 }
  0xc0   : > { %v360_v34 = vpop.permute.xlu1 %359 }
  0xc1   : > { %v358_v4 = vpop.permute.xlu0 %357  ;;  %v364_v35 = vmin.f32 %v348_v26, %v360_v34 }
  0xc2   : > { %v363_v5 = vmin.f32 %v347_v27, %v358_v4 }
  0xc4   : > { %v370_v38 = vpop.permute.xlu1 %369 }
  0xc5   : > { %v368_v39 = vpop.permute.xlu0 %367  ;;  %v374_v40 = vmax.f32 %v356_v32, %v370_v38 }
  0xc6   : > { %v373_v41 = vmax.f32 %v355_v33, %v368_v39 }
  0xc8   : > { %v380_v42 = vpop.permute.xlu1 %379 }
  0xc9   : > { %v378_v6 = vpop.permute.xlu0 %377  ;;  %v384_v10 = vmin.f32 %v364_v35, %v380_v42 }
  0xca   : > { %v383_v11 = vmin.f32 %v363_v5, %v378_v6 }
  0xcc   : > { %v388_v43 = vpop.permute.xlu1 %387 }
  0xcd   : > { %v386_v7 = vpop.permute.xlu0 %385  ;;  %v392_v18 = vmax.f32 %v374_v40, %v388_v43 }
  0xce   : > { %v391_v19 = vmax.f32 %v373_v41, %v386_v7 }
  0xd0   : > { %v396_v44 = vpop.permute.xlu1 %395 }
  0xd1   : > { %v394_v45 = vpop.permute.xlu0 %393  ;;  %v400_v20 = vmin.f32 %v384_v10, %v396_v44 }
  0xd2   : > { %v399_v21 = vmin.f32 %v383_v11, %v394_v45 }
  0xd4   : > { %v404_v46 = vpop.permute.xlu1 %403 }
  0xd5   : > { %v402_v47 = vpop.permute.xlu0 %401  ;;  %v408_v22 = vmax.f32 %v392_v18, %v404_v46 }
  0xd6   : > { %v407_v23 = vmax.f32 %v391_v19, %v402_v47 }
  0xd8   : > { %v412_v48 = vpop.permute.xlu1 %411 }
  0xd9   : > { %v410_v49 = vpop.permute.xlu0 %409  ;;  %v416_v24 = vmin.f32 %v400_v20, %v412_v48 }
  0xda   : > { %v415_v25 = vmin.f32 %v399_v21, %v410_v49 }
  0xdc   : > { %v420_v50 = vpop.permute.xlu1 %419 }
  0xdd   : > { %v418_v51 = vpop.permute.xlu0 %417  ;;  %v424_v30 = vmax.f32 %v408_v22, %v420_v50 }
  0xde   : > { %v423_v31 = vmax.f32 %v407_v23, %v418_v51 }
  0xe0   : > { %v428_v52 = vpop.permute.xlu1 %427 }
  0xe1   : > { %v426_v53 = vpop.permute.xlu0 %425  ;;  %v432_v32 = vmin.f32 %v416_v24, %v428_v52 }
  0xe2   : > { %v431_v33 = vmin.f32 %v415_v25, %v426_v53 }
  0xe4   : > { %v440_v54 = vpop.permute.xlu1 %439 }
  0xe5   : > { %v438_v55 = vpop.permute.xlu0 %437  ;;  %v444_v34 = vmax.f32 %v424_v30, %v440_v54 }
  0xe6   : > { %v443_v4 = vmax.f32 %v423_v31, %v438_v55 }
  0xe8   : > { %v452_v56 = vpop.permute.xlu1 %451 }
  0xe9   : > { %v450_v57 = vpop.permute.xlu0 %449  ;;  %v456_v35 = vmin.f32 %v432_v32, %v452_v56 }
  0xea   : > { %v455_v5 = vmin.f32 %v431_v33, %v450_v57 }
  0xec   : > { %v460_v58 = vpop.permute.xlu1 %459 }
  0xed   : > { %v458_v59 = vpop.permute.xlu0 %457  ;;  %v464_v40 = vmax.f32 %v444_v34, %v460_v58 }
  0xee   : > { %v463_v41 = vmax.f32 %v443_v4, %v458_v59 }
  0xef   : > { %v474_v44 = vmax.f32 %v464_v40, %v895_v12 }
  0xf0   : > { %v468_v60 = vpop.permute.xlu1 %467  ;;  %v473_v45 = vmax.f32 %v463_v41, %v898_v13 }
  0xf1   : > { %v466_v61 = vpop.permute.xlu0 %465  ;;  %v472_v42 = vmin.f32 %v456_v35, %v468_v60 }
  0xf2   : > { %v471_v6 = vmin.f32 %v455_v5, %v466_v61 }
  0xf3   : > { %v476_v46 = vmin.f32 %v472_v42, %v905_v14 }
  0xf4   : > { %v480_v62 = vpop.permute.xlu1 %479  ;;  %v475_v47 = vmin.f32 %v471_v6, %v908_v15 }
  0xf5   : > { %v478_v63 = vpop.permute.xlu0 %477  ;;  %v484_v48 = vmax.f32 %v474_v44, %v480_v62 }
  0xf6   : > { %v483_v49 = vmax.f32 %v473_v45, %v478_v63 }
  0xf8   : > { %v488_v0 = vpop.permute.xlu1 %487 }
  0xf9   : > { %v486_v1 = vpop.permute.xlu0 %485  ;;  %v492_v50 = vmin.f32 %v476_v46, %v488_v0 }
  0xfa   : > { %v491_v51 = vmin.f32 %v475_v47, %v486_v1 }
  0xfc   : > { %v496_v2 = vpop.permute.xlu1 %495 }
  0xfd   : > { %v494_v3 = vpop.permute.xlu0 %493  ;;  %v500_v54 = vmax.f32 %v484_v48, %v496_v2 }
  0xfe   : > { %v499_v55 = vmax.f32 %v483_v49, %v494_v3 }
 0x100   : > { %v504_v8 = vpop.permute.xlu1 %503 }
 0x101   : > { %v502_v9 = vpop.permute.xlu0 %501  ;;  %v508_v56 = vmin.f32 %v492_v50, %v504_v8 }
 0x102   : > { %v507_v57 = vmin.f32 %v491_v51, %v502_v9 }
 0x104   : > { %v516_v16 = vpop.permute.xlu1 %515 }
 0x105   : > { %v514_v17 = vpop.permute.xlu0 %513  ;;  %v520_v58 = vmax.f32 %v500_v54, %v516_v16 }
 0x106   : > { %v519_v59 = vmax.f32 %v499_v55, %v514_v17 }
 0x108   : > { %v528_v26 = vpop.permute.xlu1 %527 }
 0x109   : > { %v526_v27 = vpop.permute.xlu0 %525  ;;  %v532_v60 = vmin.f32 %v508_v56, %v528_v26 }
 0x10a   : > { %v531_v12 = vmin.f32 %v507_v57, %v526_v27 }
 0x10c   : > { %v536_v38 = vpop.permute.xlu1 %535 }
 0x10d   : > { %v534_v39 = vpop.permute.xlu0 %533  ;;  %v540_v10 = vmax.f32 %v520_v58, %v536_v38 }
 0x10e   : > { %v539_v14 = vmax.f32 %v519_v59, %v534_v39 }
 0x10f   : > { %v550_v0 = vmax.f32 %v540_v10, %v939_v28  ;;  %v208_v28 = vld [vmem:[%s193_s28 + $0x8] sm:$0xff] }
 0x110   : > { %v544_v43 = vpop.permute.xlu1 %543  ;;  %v549_v1 = vmax.f32 %v539_v14, %v942_v29  ;;  %v207_v29 = vld [vmem:[%s193_s28] sm:$0xff]  ;;  %v588_v38 = vmax.f32 %v208_v28, 0.0 }
 0x111   : > { %v542_v7 = vpop.permute.xlu0 %541  ;;  %v548_v11 = vmin.f32 %v532_v60, %v544_v43  ;;  %v587_v39 = vmax.f32 %v207_v29, 0.0 }
 0x112   : > { %v547_v15 = vmin.f32 %v531_v12, %v542_v7 }
 0x113   : > { %v552_v2 = vmin.f32 %v548_v11, %v951_v36  ;;  %v602_v36 = vand.u32 2147483647, %v208_v28 }
 0x114   : > { %v556_v52 = vpop.permute.xlu1 %555  ;;  %v551_v3 = vmin.f32 %v547_v15, %v954_v37  ;;  %v601_v37 = vand.u32 2147483647, %v207_v29 }
 0x115   : > { %v554_v53 = vpop.permute.xlu0 %553  ;;  %v560_v8 = vmax.f32 %v550_v0, %v556_v52  ;;  %v604_v26 = vsub.f32 0.0, %v602_v36 }
 0x116   : > { %v559_v9 = vmax.f32 %v549_v1, %v554_v53  ;;  %v603_v27 = vsub.f32 0.0, %v601_v37 }
 0x117   : > { %v607_v30 = vmul.f32 1.442695, %v604_v26 }
 0x118   : > { %v564_v61 = vpop.permute.xlu1 %563  ;;  %v605_v31 = vmul.f32 1.442695, %v603_v27 }
 0x119   : > { %v562_v13 = vpop.permute.xlu0 %561  ;;  %v568_v16 = vmin.f32 %v552_v2, %v564_v61  ;;  %725 = vpow2.f32 %v607_v30 }
 0x11a   : > { %v567_v17 = vmin.f32 %v551_v3, %v562_v13  ;;  %727 = vpow2.f32 %v605_v31 }
 0x11c   : > { %v572_v62 = vpop.permute.xlu1 %571 }
 0x11d   : > { %v570_v63 = vpop.permute.xlu0 %569  ;;  %v576_v20 = vmax.f32 %v560_v8, %v572_v62 }
 0x11e   : > { %v575_v21 = vmax.f32 %v559_v9, %v570_v63 }
 0x120   : > { %v580_v18 = vpop.permute.xlu1 %579 }
 0x121   : > { %v578_v19 = vpop.permute.xlu0 %577  ;;  %v584_v22 = vmin.f32 %v568_v16, %v580_v18 }
 0x122   : > { %v583_v23 = vmin.f32 %v567_v17, %v578_v19 }
 0x123   : > { %v586_v24 = vsub.f32 %v576_v20, %v584_v22  ;;  %v726_v32 = vpop.eup %725 }
 0x124   : > { %v585_v25 = vsub.f32 %v575_v21, %v583_v23  ;;  %v728_v33 = vpop.eup %727  ;;  %v610_v34 = vadd.f32 1.0, %v726_v32 }
 0x125   : > { %593 = vrot.lane.b32.xlu1 %v586_v24, %s744_s24  ;;  %v609_v4 = vadd.f32 1.0, %v728_v33 }
 0x126   : > { %591 = vrot.lane.b32.xlu0 %v585_v25, %s744_s24  ;;  %729 = vlog2.f32 %v610_v34 }
 0x127   : > { %731 = vlog2.f32 %v609_v4 }
 0x130   : > { %v730_v35 = vpop.eup %729 }
 0x131   : > { %v732_v5 = vpop.eup %731  ;;  %v614_v6 = vmul.f32 0.6931472, %v730_v35 }
 0x132   : > { %v612_v7 = vmul.f32 0.6931472, %v732_v5 }
 0x197   : > { %v594_v40 = vpop.permute.xlu1 %593 }
 0x198   : > { %v592_v41 = vpop.permute.xlu0 %591  ;;  %v598_v42 = vmul.f32 %v594_v40, %v208_v28 }
 0x199   : > { %v597_v43 = vmul.f32 %v592_v41, %v207_v29 }
 0x19a   : > { %v600_v44 = vsub.f32 %v588_v38, %v598_v42 }
 0x19b   : > { %v599_v45 = vsub.f32 %v587_v39, %v597_v43 }
 0x19c   : > { %v616_v46 = vadd.f32 %v614_v6, %v600_v44 }
 0x19d   : > { %v615_v47 = vadd.f32 %v612_v7, %v599_v45 }
 0x19e   : > { %v619_v48 = vsel %vm617_vm0, %v616_v46, 0.0 }
 0x19f   : > { %v618_v49 = vsel %vm617_vm0, %v615_v47, 0.0 }
 0x1a0   : > { %v620_v50 = vadd.f32 %v619_v48, %v618_v49 }
 0x1a2   : > { %v621_v51 = vrot.slane %v620_v50, 4 }
 0x1a4   : > { %v622_v52 = vadd.f32 %v621_v51, %v620_v50 }
 0x1a6   : > { %v623_v53 = vrot.slane %v622_v52, 2 }
 0x1a8   : > { %v624_v54 = vadd.f32 %v623_v53, %v622_v52 }
 0x1aa   : > { %v625_v55 = vrot.slane %v624_v54, 1 }
 0x1ac   : > { %v626_v56 = vadd.f32 %v625_v55, %v624_v54 }
 0x1ae   : > { %628 = vst.msk [vmem:[%s206_s4] sm:$0x1] %vm627_vm1, %v626_v56 }
 0x1af PF: > { %s13_s12 = sadd.s32 1, %s739_s12  }
 0x1b0   : > { %p10_p4 = scmp.ge.s32.totalorder %s13_s12, 4  }
 0x1b2   :  { %12 = sbr.rel (!%p10_p4) target bundleno = 1 (0x1), region = 68 }

// kernel: compute_loss.2
= control target key start
LH: loop header
LB: loop body
LE: loop exit
PB: predicated region body
PF: predicated region fallthrough
CT: control target
= control target key end

     0   :  { %s937_s21 = smov 0   ;;  %s939_s22 = smov 0   ;;  %s1101_s0 = inlined_call_operand.vmem [shape: f32[2,2,128], index: 0, kind: input, shape index: {}]   ;;  %s1102_s1 = inlined_call_operand.vmem [shape: f32[2,2,128], index: 1, kind: input, shape index: {}]   ;;  %s1103_s2 = inlined_call_operand.vmem [shape: f32[2,2,128], index: 2, kind: input, shape index: {}]   ;;  %s1104_s3 = inlined_call_operand.vmem [shape: f32[2,2,128], index: 3, kind: input, shape index: {}]   ;;  %s1105_s4 = inlined_call_operand.vmem [shape: f32[2,2,128], index: 4, kind: input, shape index: {}]   ;;  %s1106_s5 = inlined_call_operand.vmem [shape: f32[2,2,128], index: 5, kind: input, shape index: {}]   ;;  %s1107_s6 = inlined_call_operand.vmem [shape: f32[2,16,128], index: 6, kind: output, shape index: {}]  }
   0x1   :  { %s941_s23 = smov 0  }
   0x2 LB: > { %s28_s24 = sadd.s32 1, %s895_s22  ;;  %p810_p0 = scmp.ge.s32.totalorder %s899_s23, 1  ;;  %s899_s23 = sphi %s941_s23, %s16_s23   ;;  %s895_s22 = sphi %s939_s22, %s1109_s22   ;;  %s891_s21 = sphi %s937_s21, %s1108_s21  }
   0x3   : > { %p30_p1 = scmp.ge.s32.totalorder %s28_s24, 2  ;;  %p298_p2 = scmp.lt.s32.totalorder %s899_s23, 3 }
   0x5   : > { %s1111_s24 = smov (%p30_p1, %s28_s24), 0  ;;  %p299_p3 = pnand %p810_p0, %p298_p2 }
   0x6   : > { %p365_p4 = scmp.lt.s32.totalorder (!%p299_p3), %s891_s21, 1  ;;  %vm420_vm0 = vcmask (!%p299_p3), 1041408   ;;  %v901_v0 = vmov (!%p299_p3), 0.0  }
   0x7   : > { %302 = sbr.rel (%p299_p3) target bundleno = 95 (0x5f), region = 44 }
   0xe   : > { %s1113_s21 = smov (!%p365_p4, %s891_s21), 1 }
   0xf   : > { %s821_s25 = sshll.u32 %s1113_s21, 4  ;;  %s955_s26 = sshll.u32 %s1113_s21, 1 }
  0x10   : > { %s960_s29 = scalar_lea.vmem %s1107_s6, %s821_s25  ;;  %s406_s8 = scalar_lea.vmem %s1106_s5, %s955_s26 }
  0x11   : > { %416 = vst [vmem:[%s960_s29] sm:$0xff] %v901_v0  ;;  %417 = vst [vmem:[%s960_s29 + $0x8] sm:$0xff] %v901_v0  ;;  %v968_v1 = vld [vmem:[%s406_s8] sm:$0x3]  ;;  %s371_s11 = scalar_lea.vmem %s1101_s0, %s955_s26  ;;  %s378_s14 = scalar_lea.vmem %s1102_s1, %s955_s26 }
  0x12   : > { %v421_v2 = vsel %vm420_vm0, %v968_v1, 0.0  ;;  %v980_v3 = vld [vmem:[%s371_s11] sm:$0x3]  ;;  %s385_s17 = scalar_lea.vmem %s1103_s2, %s955_s26  ;;  %s392_s20 = scalar_lea.vmem %s1104_s3, %s955_s26 }
  0x13   : > { %v982_v4 = vld [vmem:[%s378_s14] sm:$0x3]  ;;  %v422_v5 = vrot.slane %v421_v2, 4  ;;  %v431_v6 = vand.u32 2147483647, %v980_v3  ;;  %s399_s27 = scalar_lea.vmem %s1105_s4, %s955_s26  ;;  %v440_v37 = vmax.f32 %v980_v3, 0.0  ;;  %v441_v38 = vmul.f32 %v980_v3, %v968_v1 }
  0x14   : > { %v478_v7 = vand.u32 2147483647, %v982_v4  ;;  %v990_v8 = vld [vmem:[%s385_s17] sm:$0x3]  ;;  %vm435_vm1 = vcmp.ge.f32.partialorder %v980_v3, 0.0  ;;  %v487_v39 = vmax.f32 %v982_v4, 0.0  ;;  %v488_v40 = vmul.f32 %v982_v4, %v968_v1 }
  0x15   : > { %v423_v9 = vadd.f32 %v422_v5, %v421_v2  ;;  %v432_v10 = vsub.f32 0.0, %v431_v6  ;;  %v525_v11 = vand.u32 2147483647, %v990_v8  ;;  %v1001_v18 = vld [vmem:[%s392_s20] sm:$0x3]  ;;  %v534_v42 = vmax.f32 %v990_v8, 0.0 }
  0x16   : > { %v479_v12 = vsub.f32 0.0, %v478_v7  ;;  %v618_v21 = vld [vmem:[%s399_s27] sm:$0x3]  ;;  %v572_v23 = vand.u32 2147483647, %v1001_v18  ;;  %v535_v43 = vmul.f32 %v990_v8, %v968_v1  ;;  %v581_v44 = vmax.f32 %v1001_v18, 0.0 }
  0x17   : > { %v424_v13 = vrot.slane %v423_v9, 2  ;;  %v433_v14 = vmul.f32 1.442695, %v432_v10  ;;  %v526_v15 = vsub.f32 0.0, %v525_v11  ;;  %v619_v26 = vand.u32 2147483647, %v618_v21 }
  0x18   : > { %v480_v17 = vmul.f32 1.442695, %v479_v12  ;;  %v419_v22 = vld [vmem:[%s960_s29] sm:$0x1]  ;;  %v573_v25 = vsub.f32 0.0, %v572_v23  ;;  %v582_v45 = vmul.f32 %v1001_v18, %v968_v1  ;;  %vm482_vm2 = vcmp.ge.f32.partialorder %v982_v4, 0.0 }
  0x19   : > { %v425_v16 = vadd.f32 %v424_v13, %v423_v9  ;;  %847 = vpow2.f32 %v433_v14  ;;  %v527_v19 = vmul.f32 1.442695, %v526_v15  ;;  %v620_v29 = vsub.f32 0.0, %v619_v26 }
  0x1a   : > { %849 = vpow2.f32 %v480_v17  ;;  %v574_v28 = vmul.f32 1.442695, %v573_v25  ;;  %v628_v47 = vmax.f32 %v618_v21, 0.0  ;;  %v629_v48 = vmul.f32 %v618_v21, %v968_v1 }
  0x1b   : > { %v426_v20 = vrot.slane %v425_v16, 1  ;;  %851 = vpow2.f32 %v527_v19  ;;  %v621_v30 = vmul.f32 1.442695, %v620_v29  ;;  %v442_v51 = vsub.f32 %v440_v37, %v441_v38 }
  0x1c   : > { %853 = vpow2.f32 %v574_v28  ;;  %vm529_vm3 = vcmp.ge.f32.partialorder %v990_v8, 0.0  ;;  %v489_v52 = vsub.f32 %v487_v39, %v488_v40  ;;  %vm576_vm4 = vcmp.ge.f32.partialorder %v1001_v18, 0.0 }
  0x1d   : > { %v427_v24 = vadd.f32 %v426_v20, %v425_v16  ;;  %855 = vpow2.f32 %v621_v30  ;;  %vm623_vm5 = vcmp.ge.f32.partialorder %v618_v21, 0.0  ;;  %v1023_v56 = vsub.f32 %v534_v42, %v535_v43 }
  0x1e   : > { %v1025_v57 = vsub.f32 %v581_v44, %v582_v45  ;;  %v1027_v61 = vsub.f32 %v628_v47, %v629_v48  ;;  %v446_v47 = vld [vmem:[%s960_s29 + $0x1] sm:$0x1] }
  0x1f   : > { %v428_v27 = vadd.f32 %v427_v24, %v419_v22 }
  0x21   : > { %429 = vst [vmem:[%s960_s29] sm:$0x1] %v428_v27 }
  0x23   : > { %v848_v31 = vpop.eup %847 }
  0x24   : > { %v437_v32 = vadd.f32 1.0, %v848_v31  ;;  %v850_v33 = vpop.eup %849  ;;  %v436_v50 = vsel %vm435_vm1, 1.0, %v848_v31 }
  0x25   : > { %v852_v34 = vpop.eup %851  ;;  %v484_v35 = vadd.f32 1.0, %v850_v33  ;;  %v483_v55 = vsel %vm482_vm2, 1.0, %v850_v33 }
  0x26   : > { %857 = vrcp.f32 %v437_v32  ;;  %v531_v36 = vadd.f32 1.0, %v852_v34  ;;  %v854_v41 = vpop.eup %853  ;;  %v530_v60 = vsel %vm529_vm3, 1.0, %v852_v34 }
  0x27   : > { %859 = vlog2.f32 %v437_v32  ;;  %v578_v46 = vadd.f32 1.0, %v854_v41  ;;  %v856_v49 = vpop.eup %855  ;;  %v1029_v0 = vsel %vm576_vm4, 1.0, %v854_v41 }
  0x28   : > { %861 = vrcp.f32 %v484_v35  ;;  %v625_v53 = vadd.f32 1.0, %v856_v49  ;;  %v1032_v2 = vsel %vm623_vm5, 1.0, %v856_v49 }
  0x29   : > { %863 = vlog2.f32 %v484_v35 }
  0x2a   : > { %865 = vrcp.f32 %v531_v36 }
  0x2b   : > { %867 = vlog2.f32 %v531_v36 }
  0x2c   : > { %869 = vrcp.f32 %v578_v46 }
  0x2d   : > { %871 = vlog2.f32 %v578_v46 }
  0x2e   : > { %873 = vrcp.f32 %v625_v53 }
  0x2f   : > { %875 = vlog2.f32 %v625_v53 }
  0x30   : > { %v858_v54 = vpop.eup %857 }
  0x31   : > { %v860_v58 = vpop.eup %859  ;;  %v439_v59 = vmul.f32 %v858_v54, %v436_v50 }
  0x32   : > { %v862_v62 = vpop.eup %861  ;;  %v444_v63 = vmul.f32 0.6931472, %v860_v58 }
  0x33   : > { %v864_v3 = vpop.eup %863  ;;  %v447_v4 = vsel %vm420_vm0, %v439_v59, 0.0  ;;  %v457_v5 = vmul.f32 %v439_v59, %v968_v1  ;;  %v486_v6 = vmul.f32 %v862_v62, %v483_v55  ;;  %v456_v59 = vld [vmem:[%s960_s29 + $0x2] sm:$0x1]  ;;  %v493_v62 = vld [vmem:[%s960_s29 + $0x4] sm:$0x1] }
  0x34   : > { %v866_v7 = vpop.eup %865  ;;  %v448_v8 = vrot.slane %v447_v4, 4  ;;  %v445_v9 = vadd.f32 %v444_v63, %v442_v51  ;;  %v491_v10 = vmul.f32 0.6931472, %v864_v3 }
  0x35   : > { %v458_v11 = vsel %vm420_vm0, %v457_v5, 0.0  ;;  %v494_v12 = vsel %vm420_vm0, %v486_v6, 0.0  ;;  %v504_v13 = vmul.f32 %v486_v6, %v968_v1  ;;  %v533_v14 = vmul.f32 %v866_v7, %v530_v60  ;;  %v868_v31 = vpop.eup %867  ;;  %v467_v7 = vld [vmem:[%s960_s29 + $0x3] sm:$0x1] }
  0x36   : > { %v449_v15 = vadd.f32 %v448_v8, %v447_v4  ;;  %v459_v16 = vrot.slane %v458_v11, 4  ;;  %v468_v17 = vsel %vm420_vm0, %v445_v9, 0.0  ;;  %v495_v18 = vrot.slane %v494_v12, 4  ;;  %v870_v36 = vpop.eup %869 }
  0x37   : > { %v469_v19 = vrot.slane %v468_v17, 4  ;;  %v505_v20 = vsel %vm420_vm0, %v504_v13, 0.0  ;;  %v492_v21 = vadd.f32 %v491_v10, %v489_v52  ;;  %v541_v22 = vsel %vm420_vm0, %v533_v14, 0.0  ;;  %v872_v41 = vpop.eup %871 }
  0x38   : > { %v450_v23 = vrot.slane %v449_v15, 2  ;;  %v460_v24 = vadd.f32 %v459_v16, %v458_v11  ;;  %v496_v25 = vadd.f32 %v495_v18, %v494_v12  ;;  %v506_v26 = vrot.slane %v505_v20, 4  ;;  %v874_v46 = vpop.eup %873  ;;  %v503_v11 = vld [vmem:[%s960_s29 + $0x5] sm:$0x1]  ;;  %v540_v18 = vld [vmem:[%s960_s29 + $0x7] sm:$0x1] }
  0x39   : > { %v470_v27 = vadd.f32 %v469_v19, %v468_v17  ;;  %v515_v28 = vsel %vm420_vm0, %v492_v21, 0.0  ;;  %v542_v29 = vrot.slane %v541_v22, 4  ;;  %v551_v30 = vmul.f32 %v533_v14, %v968_v1  ;;  %v1046_v52 = vpop.eup %875 }
  0x3a   : > { %v451_v32 = vadd.f32 %v450_v23, %v449_v15  ;;  %v461_v33 = vrot.slane %v460_v24, 2  ;;  %v497_v34 = vrot.slane %v496_v25, 2  ;;  %v507_v35 = vadd.f32 %v506_v26, %v505_v20 }
  0x3b   : > { %v471_v37 = vrot.slane %v470_v27, 2  ;;  %v516_v38 = vrot.slane %v515_v28, 4  ;;  %v543_v39 = vadd.f32 %v542_v29, %v541_v22  ;;  %v552_v40 = vsel %vm420_vm0, %v551_v30, 0.0 }
  0x3c   : > { %v452_v42 = vrot.slane %v451_v32, 1  ;;  %v462_v43 = vadd.f32 %v461_v33, %v460_v24  ;;  %v498_v44 = vadd.f32 %v497_v34, %v496_v25  ;;  %v508_v45 = vrot.slane %v507_v35, 2  ;;  %v514_v25 = vld [vmem:[%s960_s29 + $0x6] sm:$0x1]  ;;  %v550_v33 = vld [vmem:[%s960_s29 + $0x8] sm:$0x1] }
  0x3d   : > { %v472_v48 = vadd.f32 %v471_v37, %v470_v27  ;;  %v517_v49 = vadd.f32 %v516_v38, %v515_v28  ;;  %v544_v50 = vrot.slane %v543_v39, 2  ;;  %v553_v51 = vrot.slane %v552_v40, 4 }
  0x3e   : > { %v453_v53 = vadd.f32 %v452_v42, %v451_v32  ;;  %v463_v54 = vrot.slane %v462_v43, 1  ;;  %v499_v55 = vrot.slane %v498_v44, 1  ;;  %v509_v58 = vadd.f32 %v508_v45, %v507_v35 }
  0x3f   : > { %v473_v60 = vrot.slane %v472_v48, 1  ;;  %v518_v63 = vrot.slane %v517_v49, 2  ;;  %v545_v3 = vadd.f32 %v544_v50, %v543_v39  ;;  %v554_v4 = vadd.f32 %v553_v51, %v552_v40 }
  0x40   : > { %v454_v5 = vadd.f32 %v453_v53, %v446_v47  ;;  %v464_v6 = vadd.f32 %v463_v54, %v462_v43  ;;  %v500_v8 = vadd.f32 %v499_v55, %v498_v44  ;;  %v510_v9 = vrot.slane %v509_v58, 1 }
  0x41   : > { %v474_v10 = vadd.f32 %v473_v60, %v472_v48  ;;  %v519_v12 = vadd.f32 %v518_v63, %v517_v49  ;;  %v546_v13 = vrot.slane %v545_v3, 1  ;;  %v555_v14 = vrot.slane %v554_v4, 2 }
  0x42   : > { %455 = vst [vmem:[%s960_s29 + $0x1] sm:$0x1] %v454_v5  ;;  %v465_v15 = vadd.f32 %v464_v6, %v456_v59  ;;  %v501_v16 = vadd.f32 %v500_v8, %v493_v62  ;;  %v511_v17 = vadd.f32 %v510_v9, %v509_v58  ;;  %v538_v19 = vmul.f32 0.6931472, %v868_v31  ;;  %v561_v9 = vld [vmem:[%s960_s29 + $0x9] sm:$0x1] }
  0x43   : > { %v475_v20 = vadd.f32 %v474_v10, %v467_v7  ;;  %v520_v21 = vrot.slane %v519_v12, 1  ;;  %v547_v22 = vadd.f32 %v546_v13, %v545_v3  ;;  %v556_v23 = vadd.f32 %v555_v14, %v554_v4  ;;  %v587_v10 = vld [vmem:[%s960_s29 + $0xa] sm:$0x1] }
  0x44   : > { %466 = vst [vmem:[%s960_s29 + $0x2] sm:$0x1] %v465_v15  ;;  %502 = vst [vmem:[%s960_s29 + $0x4] sm:$0x1] %v501_v16  ;;  %v512_v24 = vadd.f32 %v511_v17, %v503_v11  ;;  %v539_v26 = vadd.f32 %v538_v19, %v1023_v56  ;;  %v580_v27 = vmul.f32 %v870_v36, %v1029_v0  ;;  %v585_v28 = vmul.f32 0.6931472, %v872_v41 }
  0x45   : > { %476 = vst [vmem:[%s960_s29 + $0x3] sm:$0x1] %v475_v20  ;;  %v521_v29 = vadd.f32 %v520_v21, %v519_v12  ;;  %v548_v30 = vadd.f32 %v547_v22, %v540_v18  ;;  %v557_v31 = vrot.slane %v556_v23, 1  ;;  %v627_v32 = vmul.f32 %v874_v46, %v1032_v2  ;;  %v597_v17 = vld [vmem:[%s960_s29 + $0xb] sm:$0x1] }
  0x46   : > { %513 = vst [vmem:[%s960_s29 + $0x5] sm:$0x1] %v512_v24  ;;  %v562_v34 = vsel %vm420_vm0, %v539_v26, 0.0  ;;  %v588_v35 = vsel %vm420_vm0, %v580_v27, 0.0  ;;  %v598_v37 = vmul.f32 %v580_v27, %v968_v1  ;;  %v586_v56 = vadd.f32 %v585_v28, %v1025_v57  ;;  %v608_v24 = vld [vmem:[%s960_s29 + $0xc] sm:$0x1] }
  0x47   : > { %v522_v38 = vadd.f32 %v521_v29, %v514_v25  ;;  %549 = vst [vmem:[%s960_s29 + $0x7] sm:$0x1] %v548_v30  ;;  %v558_v0 = vadd.f32 %v557_v31, %v556_v23  ;;  %v563_v36 = vrot.slane %v562_v34, 4  ;;  %v589_v39 = vrot.slane %v588_v35, 4  ;;  %v634_v25 = vld [vmem:[%s960_s29 + $0xd] sm:$0x1] }
  0x48   : > { %v599_v40 = vsel %vm420_vm0, %v598_v37, 0.0  ;;  %v609_v2 = vsel %vm420_vm0, %v586_v56, 0.0  ;;  %v635_v41 = vsel %vm420_vm0, %v627_v32, 0.0  ;;  %v645_v42 = vmul.f32 %v627_v32, %v968_v1  ;;  %v644_v29 = vld [vmem:[%s960_s29 + $0xe] sm:$0x1] }
  0x49   : > { %523 = vst [vmem:[%s960_s29 + $0x6] sm:$0x1] %v522_v38  ;;  %v559_v43 = vadd.f32 %v558_v0, %v550_v33  ;;  %v564_v44 = vadd.f32 %v563_v36, %v562_v34  ;;  %v590_v45 = vadd.f32 %v589_v39, %v588_v35  ;;  %v600_v46 = vrot.slane %v599_v40, 4  ;;  %v655_v38 = vld [vmem:[%s960_s29 + $0xf] sm:$0x1] }
  0x4a   : > { %v610_v57 = vrot.slane %v609_v2, 4  ;;  %v636_v47 = vrot.slane %v635_v41, 4  ;;  %v646_v48 = vsel %vm420_vm0, %v645_v42, 0.0  ;;  %v632_v49 = vmul.f32 0.6931472, %v1046_v52 }
  0x4b   : > { %560 = vst [vmem:[%s960_s29 + $0x8] sm:$0x1] %v559_v43  ;;  %v565_v50 = vrot.slane %v564_v44, 2  ;;  %v591_v51 = vrot.slane %v590_v45, 2  ;;  %v601_v53 = vadd.f32 %v600_v46, %v599_v40  ;;  %v647_v54 = vrot.slane %v646_v48, 4 }
  0x4c   : > { %v611_v55 = vadd.f32 %v610_v57, %v609_v2  ;;  %v637_v1 = vadd.f32 %v636_v47, %v635_v41  ;;  %v633_v58 = vadd.f32 %v632_v49, %v1027_v61 }
  0x4d   : > { %v566_v59 = vadd.f32 %v565_v50, %v564_v44  ;;  %v592_v60 = vadd.f32 %v591_v51, %v590_v45  ;;  %v602_v62 = vrot.slane %v601_v53, 2  ;;  %v648_v63 = vadd.f32 %v647_v54, %v646_v48 }
  0x4e   : > { %v612_v3 = vrot.slane %v611_v55, 2  ;;  %v638_v4 = vrot.slane %v637_v1, 2  ;;  %v656_v52 = vsel %vm420_vm0, %v633_v58, 0.0 }
  0x4f   : > { %v567_v5 = vrot.slane %v566_v59, 1  ;;  %v593_v6 = vrot.slane %v592_v60, 1  ;;  %v603_v7 = vadd.f32 %v602_v62, %v601_v53  ;;  %v649_v8 = vrot.slane %v648_v63, 2 }
  0x50   : > { %v613_v11 = vadd.f32 %v612_v3, %v611_v55  ;;  %v639_v12 = vadd.f32 %v638_v4, %v637_v1  ;;  %v657_v61 = vrot.slane %v656_v52, 4 }
  0x51   : > { %v568_v13 = vadd.f32 %v567_v5, %v566_v59  ;;  %v594_v14 = vadd.f32 %v593_v6, %v592_v60  ;;  %v604_v15 = vrot.slane %v603_v7, 1  ;;  %v650_v16 = vadd.f32 %v649_v8, %v648_v63 }
  0x52   : > { %v614_v18 = vrot.slane %v613_v11, 1  ;;  %v640_v19 = vrot.slane %v639_v12, 1  ;;  %v658_v20 = vadd.f32 %v657_v61, %v656_v52 }
  0x53   : > { %v569_v21 = vadd.f32 %v568_v13, %v561_v9  ;;  %v595_v22 = vadd.f32 %v594_v14, %v587_v10  ;;  %v605_v23 = vadd.f32 %v604_v15, %v603_v7  ;;  %v651_v26 = vrot.slane %v650_v16, 1 }
  0x54   : > { %v615_v27 = vadd.f32 %v614_v18, %v613_v11  ;;  %v641_v28 = vadd.f32 %v640_v19, %v639_v12  ;;  %v659_v30 = vrot.slane %v658_v20, 2 }
  0x55   : > { %570 = vst [vmem:[%s960_s29 + $0x9] sm:$0x1] %v569_v21  ;;  %596 = vst [vmem:[%s960_s29 + $0xa] sm:$0x1] %v595_v22  ;;  %v606_v31 = vadd.f32 %v605_v23, %v597_v17  ;;  %v652_v32 = vadd.f32 %v651_v26, %v650_v16 }
  0x56   : > { %v616_v33 = vadd.f32 %v615_v27, %v608_v24  ;;  %v642_v34 = vadd.f32 %v641_v28, %v634_v25  ;;  %v660_v35 = vadd.f32 %v659_v30, %v658_v20 }
  0x57   : > { %607 = vst [vmem:[%s960_s29 + $0xb] sm:$0x1] %v606_v31  ;;  %v653_v37 = vadd.f32 %v652_v32, %v644_v29 }
  0x58   : > { %617 = vst [vmem:[%s960_s29 + $0xc] sm:$0x1] %v616_v33  ;;  %643 = vst [vmem:[%s960_s29 + $0xd] sm:$0x1] %v642_v34  ;;  %v661_v56 = vrot.slane %v660_v35, 1 }
  0x59   : > { %654 = vst [vmem:[%s960_s29 + $0xe] sm:$0x1] %v653_v37 }
  0x5a   : > { %v662_v0 = vadd.f32 %v661_v56, %v660_v35 }
  0x5c   : > { %v663_v36 = vadd.f32 %v662_v0, %v655_v38 }
  0x5e   : > { %664 = vst [vmem:[%s960_s29 + $0xf] sm:$0x1] %v663_v36 }
  0x5f PF: > { %s16_s23 = sadd.s32 1, %s899_s23   ;;  %s1108_s21 = smov %s895_s22 }
  0x60   : > { %p13_p5 = scmp.ge.s32.totalorder %s16_s23, 4   ;;  %s1109_s22 = smov %s1111_s24 }
  0x62   :  { %15 = sbr.rel (!%p13_p5) target bundleno = 2 (0x2), region = 93 }

</bundles_post_ra>
